<compile_context>
chip_gen: v7x
topology: tpu7x:2x2x1
jax: 0.10.0
libtpu: 0.0.40
codegen_flags: <defaults>
</compile_context>

<pallas_src>
import functools

import jax
import jax.numpy as jnp
from jax.experimental import pallas as pl
from jax.experimental.pallas import tpu as pltpu


def _round_up(a, m):
    return (a + m - 1) // m * m


def _mlp_kernel(x_ref, w1_ref, b1_ref, w2_ref, b2_ref, w3_ref, b3_ref,
                w4_ref, b4_ref, o_ref, *, dim_out):
    # x tile: (TM, dim_in) f32 -> bf16 for the MXU; accumulate in f32.
    h = jnp.dot(x_ref[...].astype(jnp.bfloat16), w1_ref[...],
                preferred_element_type=jnp.float32) + b1_ref[...]
    h = jnp.maximum(h, 0.0).astype(jnp.bfloat16)

    h = jnp.dot(h, w2_ref[...], preferred_element_type=jnp.float32) + b2_ref[...]
    h = jnp.maximum(h, 0.0).astype(jnp.bfloat16)

    h = jnp.dot(h, w3_ref[...], preferred_element_type=jnp.float32) + b3_ref[...]
    h = jnp.maximum(h, 0.0).astype(jnp.bfloat16)

    # Final layer is lane-padded to 128 columns; mask the padding before softmax.
    logits = jnp.dot(h, w4_ref[...], preferred_element_type=jnp.float32) + b4_ref[...]
    col = jax.lax.broadcasted_iota(jnp.int32, logits.shape, 1)
    logits = jnp.where(col < dim_out, logits, jnp.float32(-1e30))

    # Numerically-stable log_softmax over the last axis (padded cols contribute 0).
    m = jnp.max(logits, axis=-1, keepdims=True)
    shifted = logits - m
    lse = jnp.log(jnp.sum(jnp.exp(shifted), axis=-1, keepdims=True))
    o_ref[...] = (shifted - lse).astype(o_ref.dtype)


@functools.partial(jax.jit, static_argnames=("dim_out",))
def mlp_forward(x_nchw, params, dim_out):
    """x_nchw: (B, C, H, W) float32. params: transposed bf16 weights, f32 biases
    (final layer pre-padded to 128 output columns)."""
    B = x_nchw.shape[0]
    dim_in = x_nchw.shape[1] * x_nchw.shape[2] * x_nchw.shape[3]
    x = x_nchw.reshape(B, dim_in)  # matches torch .view(-1, C*H*W) on NCHW

    w1, b1 = params["w1"], params["b1"]
    w2, b2 = params["w2"], params["b2"]
    w3, b3 = params["w3"], params["b3"]
    w4, b4 = params["w4"], params["b4"]        # already lane-padded to n_pad cols
    n_pad = w4.shape[1]

    # Batch tile: match MXU height when the batch is large, otherwise just pad
    # the batch up to the 8-sublane granule. Grid steps pipeline the x-tile DMA
    # against compute; weights stay VMEM-resident (constant index maps).
    tm = 256 if B >= 256 else _round_up(B, 8)
    b_pad = _round_up(B, tm)
    if b_pad != B:
        x = jnp.pad(x, ((0, b_pad - B), (0, 0)))

    grid = (b_pad // tm,)

    x_spec = pl.BlockSpec((tm, dim_in), lambda i: (i, 0))
    out_spec = pl.BlockSpec((tm, n_pad), lambda i: (i, 0))
    const = lambda shape: pl.BlockSpec(shape, lambda i: (0, 0))

    flops = 2 * b_pad * (dim_in * 512 + 512 * 256 + 256 * 64 + 64 * n_pad)
    bytes_accessed = (
        b_pad * dim_in * 4                                   # x (f32)
        + (dim_in * 512 + 512 * 256 + 256 * 64 + 64 * n_pad) * 2  # weights (bf16)
        + (512 + 256 + 64 + n_pad) * 4                       # biases (f32)
        + b_pad * n_pad * 4                                  # output (f32)
    )
    cost = pl.CostEstimate(flops=flops,
                           transcendentals=b_pad * (n_pad + 1),
                           bytes_accessed=bytes_accessed)

    out = pl.pallas_call(
        functools.partial(_mlp_kernel, dim_out=dim_out),
        out_shape=jax.ShapeDtypeStruct((b_pad, n_pad), jnp.float32),
        grid=grid,
        in_specs=[
            x_spec,
            const(w1.shape), const(b1.shape),
            const(w2.shape), const(b2.shape),
            const(w3.shape), const(b3.shape),
            const(w4.shape), const(b4.shape),
        ],
        out_specs=out_spec,
        compiler_params=pltpu.CompilerParams(
            dimension_semantics=("parallel",)),
        cost_estimate=cost,
    )(x, w1, b1, w2, b2, w3, b3, w4, b4)

    return out[:B, :dim_out]


def init_params(key, dim_in, dim_out):
    """Deterministic init mimicking nn.Linear default (uniform +/- 1/sqrt(fan_in)).
    Weights stored as (in, out) = PyTorch weight transposed, cast to bf16.
    Final layer is zero-padded to a lane-dense 128-multiple output width."""
    n_pad = max(128, _round_up(dim_out, 128))
    dims = [(dim_in, 512), (512, 256), (256, 64), (64, dim_out)]
    params = {}
    for i, (fan_in, fan_out) in enumerate(dims, start=1):
        key, kw, kb = jax.random.split(key, 3)
        bound = 1.0 / (fan_in ** 0.5)
        w = jax.random.uniform(kw, (fan_in, fan_out), jnp.float32,
                               minval=-bound, maxval=bound)
        b = jax.random.uniform(kb, (1, fan_out), jnp.float32,
                               minval=-bound, maxval=bound)
        if i == 4:  # lane-pad the classifier; padded cols are masked in-kernel
            w = jnp.pad(w, ((0, 0), (0, n_pad - fan_out)))
            b = jnp.pad(b, ((0, 0), (0, n_pad - fan_out)))
        params[f"w{i}"] = w.astype(jnp.bfloat16)
        params[f"b{i}"] = b  # biases stay f32 (VPU-side math in f32)
    return params


def _ref_forward(x_nchw, params, dim_out):
    """Plain-JAX reference using the same bf16-dot / f32-accumulate recipe."""
    B = x_nchw.shape[0]
    x = x_nchw.reshape(B, -1)
    h = x.astype(jnp.bfloat16)
    for i in range(1, 4):
        h = jnp.dot(h, params[f"w{i}"],
                    preferred_element_type=jnp.float32) + params[f"b{i}"]
        h = jnp.maximum(h, 0.0).astype(jnp.bfloat16)
    logits = jnp.dot(h, params["w4"],
                     preferred_element_type=jnp.float32) + params["b4"]
    logits = logits[:, :dim_out]
    return jax.nn.log_softmax(logits, axis=-1)


if __name__ == "__main__":
    key = jax.random.PRNGKey(0)
    k_x, k_p = jax.random.split(key)

    B, C, H, W = 2, 4, 16, 16           # dim_in = 4*16*16 = 1024
    dim_out = 10

    x = jax.random.normal(k_x, (B, C, H, W), jnp.float32)
    params = init_params(k_p, C * H * W, dim_out)

    out = mlp_forward(x, params, dim_out)
    out = jax.block_until_ready(out)

    assert out.shape == (B, dim_out)

    # sanity: log_softmax rows should sum (in prob space) to ~1
    row_sums = jnp.sum(jnp.exp(out), axis=1)
    assert bool(jnp.all(jnp.abs(row_sums - 1.0) < 1e-4))

    # numeric check against a plain-JAX reference with the same precision recipe
    ref = _ref_forward(x, params, dim_out)
    assert bool(jnp.all(jnp.abs(out - ref) < 1e-2))

    print("KERNEL_OK")
</pallas_src>

<mosaic_0001>
module attributes {stable_mosaic.version = 11 : i64} {
  func.func @_mlp_kernel(%arg0: i32, %arg1: memref<8x1024xf32, #tpu.memory_space<vmem>>, %arg2: memref<1024x512xbf16, #tpu.memory_space<vmem>>, %arg3: memref<1x512xf32, #tpu.memory_space<vmem>>, %arg4: memref<512x256xbf16, #tpu.memory_space<vmem>>, %arg5: memref<1x256xf32, #tpu.memory_space<vmem>>, %arg6: memref<256x64xbf16, #tpu.memory_space<vmem>>, %arg7: memref<1x64xf32, #tpu.memory_space<vmem>>, %arg8: memref<64x128xbf16, #tpu.memory_space<vmem>>, %arg9: memref<1x128xf32, #tpu.memory_space<vmem>>, %arg10: memref<8x128xf32, #tpu.memory_space<vmem>>) attributes {dimension_semantics = [#tpu.dimension_semantics<parallel>], iteration_bounds = array<i64: 1>, scalar_prefetch = 0 : i64, scratch_operands = 0 : i64, tpu.core_type = #tpu.core_type<tc>, window_params = [{transform_indices = @transform_0, window_bounds = array<i64: 8, 1024>}, {pipeline_mode = #tpu.pipeline_mode<synchronous>, transform_indices = @transform_1, window_bounds = array<i64: 1024, 512>}, {pipeline_mode = #tpu.pipeline_mode<synchronous>, transform_indices = @transform_2, window_bounds = array<i64: 1, 512>}, {pipeline_mode = #tpu.pipeline_mode<synchronous>, transform_indices = @transform_3, window_bounds = array<i64: 512, 256>}, {pipeline_mode = #tpu.pipeline_mode<synchronous>, transform_indices = @transform_4, window_bounds = array<i64: 1, 256>}, {pipeline_mode = #tpu.pipeline_mode<synchronous>, transform_indices = @transform_5, window_bounds = array<i64: 256, 64>}, {pipeline_mode = #tpu.pipeline_mode<synchronous>, transform_indices = @transform_6, window_bounds = array<i64: 1, 64>}, {pipeline_mode = #tpu.pipeline_mode<synchronous>, transform_indices = @transform_7, window_bounds = array<i64: 64, 128>}, {pipeline_mode = #tpu.pipeline_mode<synchronous>, transform_indices = @transform_8, window_bounds = array<i64: 1, 128>}, {transform_indices = @transform_9, window_bounds = array<i64: 8, 128>}]} {
    %c0 = arith.constant 0 : index
    %c0_0 = arith.constant 0 : index
    %0 = vector.load %arg1[%c0, %c0_0] : memref<8x1024xf32, #tpu.memory_space<vmem>>, vector<8x1024xf32>
    %1 = arith.truncf %0 : vector<8x1024xf32> to vector<8x1024xbf16>
    %c0_1 = arith.constant 0 : index
    %c0_2 = arith.constant 0 : index
    %2 = vector.load %arg2[%c0_1, %c0_2] : memref<1024x512xbf16, #tpu.memory_space<vmem>>, vector<1024x512xbf16>
    %cst = arith.constant dense<0.000000e+00> : vector<8x512xf32>
    %3 = tpu.matmul %1, %2, %cst {dimension_numbers = #tpu.dot_dimension_numbers<[1], [0], [0], [1], [0, 0, 1, 1], [], []>} : vector<8x1024xbf16>, vector<1024x512xbf16>, vector<8x512xf32> -> vector<8x512xf32>
    %c0_3 = arith.constant 0 : index
    %c0_4 = arith.constant 0 : index
    %4 = vector.load %arg3[%c0_3, %c0_4] : memref<1x512xf32, #tpu.memory_space<vmem>>, vector<1x512xf32>
    %5 = vector.broadcast %4 : vector<1x512xf32> to vector<8x512xf32>
    %6 = arith.addf %3, %5 : vector<8x512xf32>
    %cst_5 = arith.constant 0.000000e+00 : f32
    %7 = vector.broadcast %cst_5 : f32 to vector<8x512xf32>
    %8 = arith.maximumf %6, %7 : vector<8x512xf32>
    %9 = arith.truncf %8 : vector<8x512xf32> to vector<8x512xbf16>
    %c0_6 = arith.constant 0 : index
    %c0_7 = arith.constant 0 : index
    %10 = vector.load %arg4[%c0_6, %c0_7] : memref<512x256xbf16, #tpu.memory_space<vmem>>, vector<512x256xbf16>
    %cst_8 = arith.constant dense<0.000000e+00> : vector<8x256xf32>
    %11 = tpu.matmul %9, %10, %cst_8 {dimension_numbers = #tpu.dot_dimension_numbers<[1], [0], [0], [1], [0, 0, 1, 1], [], []>} : vector<8x512xbf16>, vector<512x256xbf16>, vector<8x256xf32> -> vector<8x256xf32>
    %c0_9 = arith.constant 0 : index
    %c0_10 = arith.constant 0 : index
    %12 = vector.load %arg5[%c0_9, %c0_10] : memref<1x256xf32, #tpu.memory_space<vmem>>, vector<1x256xf32>
    %13 = vector.broadcast %12 : vector<1x256xf32> to vector<8x256xf32>
    %14 = arith.addf %11, %13 : vector<8x256xf32>
    %cst_11 = arith.constant 0.000000e+00 : f32
    %15 = vector.broadcast %cst_11 : f32 to vector<8x256xf32>
    %16 = arith.maximumf %14, %15 : vector<8x256xf32>
    %17 = arith.truncf %16 : vector<8x256xf32> to vector<8x256xbf16>
    %c0_12 = arith.constant 0 : index
    %c0_13 = arith.constant 0 : index
    %18 = vector.load %arg6[%c0_12, %c0_13] : memref<256x64xbf16, #tpu.memory_space<vmem>>, vector<256x64xbf16>
    %cst_14 = arith.constant dense<0.000000e+00> : vector<8x64xf32>
    %19 = tpu.matmul %17, %18, %cst_14 {dimension_numbers = #tpu.dot_dimension_numbers<[1], [0], [0], [1], [0, 0, 1, 1], [], []>} : vector<8x256xbf16>, vector<256x64xbf16>, vector<8x64xf32> -> vector<8x64xf32>
    %c0_15 = arith.constant 0 : index
    %c0_16 = arith.constant 0 : index
    %20 = vector.load %arg7[%c0_15, %c0_16] : memref<1x64xf32, #tpu.memory_space<vmem>>, vector<1x64xf32>
    %21 = vector.broadcast %20 : vector<1x64xf32> to vector<8x64xf32>
    %22 = arith.addf %19, %21 : vector<8x64xf32>
    %cst_17 = arith.constant 0.000000e+00 : f32
    %23 = vector.broadcast %cst_17 : f32 to vector<8x64xf32>
    %24 = arith.maximumf %22, %23 : vector<8x64xf32>
    %25 = arith.truncf %24 : vector<8x64xf32> to vector<8x64xbf16>
    %c0_18 = arith.constant 0 : index
    %c0_19 = arith.constant 0 : index
    %26 = vector.load %arg8[%c0_18, %c0_19] : memref<64x128xbf16, #tpu.memory_space<vmem>>, vector<64x128xbf16>
    %cst_20 = arith.constant dense<0.000000e+00> : vector<8x128xf32>
    %27 = tpu.matmul %25, %26, %cst_20 {dimension_numbers = #tpu.dot_dimension_numbers<[1], [0], [0], [1], [0, 0, 1, 1], [], []>} : vector<8x64xbf16>, vector<64x128xbf16>, vector<8x128xf32> -> vector<8x128xf32>
    %c0_21 = arith.constant 0 : index
    %c0_22 = arith.constant 0 : index
    %28 = vector.load %arg9[%c0_21, %c0_22] : memref<1x128xf32, #tpu.memory_space<vmem>>, vector<1x128xf32>
    %29 = vector.broadcast %28 : vector<1x128xf32> to vector<8x128xf32>
    %30 = arith.addf %27, %29 : vector<8x128xf32>
    %31 = tpu.iota {dimensions = array<i32: 1>} : vector<8x128xi32>
    %c10_i32 = arith.constant 10 : i32
    %32 = vector.broadcast %c10_i32 : i32 to vector<8x128xi32>
    %33 = arith.cmpi slt, %31, %32 : vector<8x128xi32>
    %cst_23 = arith.constant -1.000000e+30 : f32
    %34 = vector.broadcast %cst_23 : f32 to vector<8x128xf32>
    %35 = arith.select %33, %30, %34 : vector<8x128xi1>, vector<8x128xf32>
    %cst_24 = arith.constant dense<0xFF800000> : vector<8xf32>
    %36 = vector.multi_reduction <maximumf>, %35, %cst_24 [1] : vector<8x128xf32> to vector<8xf32>
    %37 = vector.shape_cast %36 : vector<8xf32> to vector<8x1xf32>
    %38 = vector.broadcast %37 : vector<8x1xf32> to vector<8x128xf32>
    %39 = arith.subf %35, %38 : vector<8x128xf32>
    %40 = math.exp %39 : vector<8x128xf32>
    %cst_25 = arith.constant dense<0.000000e+00> : vector<8xf32>
    %41 = vector.multi_reduction <add>, %40, %cst_25 [1] : vector<8x128xf32> to vector<8xf32>
    %42 = vector.shape_cast %41 : vector<8xf32> to vector<8x1xf32>
    %43 = math.log %42 : vector<8x1xf32>
    %44 = vector.broadcast %43 : vector<8x1xf32> to vector<8x128xf32>
    %45 = arith.subf %39, %44 : vector<8x128xf32>
    %c0_26 = arith.constant 0 : index
    %c0_27 = arith.constant 0 : index
    %46 = vector.load %arg10[%c0_26, %c0_27] : memref<8x128xf32, #tpu.memory_space<vmem>>, vector<8x128xf32>
    tpu.vector_store %arg10[%c0_26, %c0_27], %45 {strides = array<i32>} : memref<8x128xf32, #tpu.memory_space<vmem>>, vector<8x128xf32>,
    return
  }
  func.func @transform_0(%arg0: i32) -> (i32, i32) {
    %c0_i32 = arith.constant 0 : i32
    %c0_i32_0 = arith.constant 0 : i32
    return %arg0, %c0_i32 : i32, i32
  }
  func.func @transform_1(%arg0: i32) -> (i32, i32) {
    %c0_i32 = arith.constant 0 : i32
    %c0_i32_0 = arith.constant 0 : i32
    %c0_i32_1 = arith.constant 0 : i32
    return %c0_i32, %c0_i32_0 : i32, i32
  }
  func.func @transform_2(%arg0: i32) -> (i32, i32) {
    %c0_i32 = arith.constant 0 : i32
    %c0_i32_0 = arith.constant 0 : i32
    %c0_i32_1 = arith.constant 0 : i32
    return %c0_i32, %c0_i32_0 : i32, i32
  }
  func.func @transform_3(%arg0: i32) -> (i32, i32) {
    %c0_i32 = arith.constant 0 : i32
    %c0_i32_0 = arith.constant 0 : i32
    %c0_i32_1 = arith.constant 0 : i32
    return %c0_i32, %c0_i32_0 : i32, i32
  }
  func.func @transform_4(%arg0: i32) -> (i32, i32) {
    %c0_i32 = arith.constant 0 : i32
    %c0_i32_0 = arith.constant 0 : i32
    %c0_i32_1 = arith.constant 0 : i32
    return %c0_i32, %c0_i32_0 : i32, i32
  }
  func.func @transform_5(%arg0: i32) -> (i32, i32) {
    %c0_i32 = arith.constant 0 : i32
    %c0_i32_0 = arith.constant 0 : i32
    %c0_i32_1 = arith.constant 0 : i32
    return %c0_i32, %c0_i32_0 : i32, i32
  }
  func.func @transform_6(%arg0: i32) -> (i32, i32) {
    %c0_i32 = arith.constant 0 : i32
    %c0_i32_0 = arith.constant 0 : i32
    %c0_i32_1 = arith.constant 0 : i32
    return %c0_i32, %c0_i32_0 : i32, i32
  }
  func.func @transform_7(%arg0: i32) -> (i32, i32) {
    %c0_i32 = arith.constant 0 : i32
    %c0_i32_0 = arith.constant 0 : i32
    %c0_i32_1 = arith.constant 0 : i32
    return %c0_i32, %c0_i32_0 : i32, i32
  }
  func.func @transform_8(%arg0: i32) -> (i32, i32) {
    %c0_i32 = arith.constant 0 : i32
    %c0_i32_0 = arith.constant 0 : i32
    %c0_i32_1 = arith.constant 0 : i32
    return %c0_i32, %c0_i32_0 : i32, i32
  }
  func.func @transform_9(%arg0: i32) -> (i32, i32) {
    %c0_i32 = arith.constant 0 : i32
    %c0_i32_0 = arith.constant 0 : i32
    return %arg0, %c0_i32 : i32, i32
  }
}

</mosaic_0001>

<bundles_post_ra>
// kernel: mlp_forward.1
= control target key start
LH: loop header
LB: loop body
LE: loop exit
PB: predicated region body
PF: predicated region fallthrough
CT: control target
= control target key end

     0   :  { %14 = vsyncpa [#allocation3], 0  ;;  %s3943_s0 = inlined_call_operand.vmem [shape: f32[8,1024], index: 0, kind: input, shape index: {}]   ;;  %s3944_s1 = inlined_call_operand.hbm [shape: bf16[1024,512], index: 1, kind: input, shape index: {}]   ;;  %s3945_s2 = inlined_call_operand.vmem [shape: f32[1,512], index: 2, kind: input, shape index: {}]   ;;  %s3946_s3 = inlined_call_operand.hbm [shape: bf16[512,256], index: 3, kind: input, shape index: {}]   ;;  %s3947_s4 = inlined_call_operand.vmem [shape: f32[1,256], index: 4, kind: input, shape index: {}]   ;;  %s3948_s5 = inlined_call_operand.vmem [shape: bf16[256,64], index: 5, kind: input, shape index: {}]   ;;  %s3949_s6 = inlined_call_operand.vmem [shape: f32[1,64], index: 6, kind: input, shape index: {}]   ;;  %s3950_s7 = inlined_call_operand.vmem [shape: bf16[64,128], index: 7, kind: input, shape index: {}]   ;;  %s3951_s8 = inlined_call_operand.vmem [shape: f32[1,128], index: 8, kind: input, shape index: {}]   ;;  %s3952_s9 = inlined_call_operand.vmem [shape: f32[8,128], index: 9, kind: output, shape index: {}]  }
   0x1   :  { %15 = vsyncpa [#allocation5], 0  ;;  %s3708_s30 = smov [#allocation2]   ;;  %s3660_s13 = scalar_lea.hbm %s3944_s1, 32768 }
   0x2   :  { %s23_s10 = sshll.u32 %s3708_s30, 4  ;;  %p3661_p0 = scmp.ne.s32.totalorder %s3944_s1, %s3660_s13  ;;  %s24_s10 = int_to_ptr.vmem [resolvable:$true] %s23_s10 }
   0x3   :  { %p3664_p1 = scmp.lt.u32.totalorder %s3660_s13, %s3944_s1 }
   0x5   :  { %p3666_p2 = pnand %p3664_p1, %p3661_p0 }
   0x7   :  { %3669 = shalt.err (!%p3666_p2)
}
   0x8   :  { %s3670_s18 = scalar_lea.vmem %s24_s10, 32768  ;;  %p3675_p4 = scmp.lt.s32.totalorder %s24_s10, %s24_s10 }
   0x9   :  { %p3671_p3 = scmp.ne.s32.totalorder %s24_s10, %s3670_s18  ;;  %p3676_p5 = scmp.lt.s32.totalorder %s3670_s18, %s3670_s18 }
   0xb   :  { %p3677_p6 = por %p3676_p5, %p3675_p4 }
   0xd   :  { %p3678_p7 = pnand %p3677_p6, %p3671_p3 }
   0xf   :  { %3681 = shalt.err (!%p3678_p7)
}
  0x10   :  { %s3709_s19 = smov 256   ;;  %s3710_s20 = smov 16  }
  0x11   :  { %29 = dma.hbm_to_vmem [thread:$0]  %s3944_s1, 32768, %s24_s10, [#allocation3], %s3709_s19, %s3709_s19, %s3710_s20  }
  0x12   :  { %s3711_s23 = smov [#allocation4]   ;;  %s3682_s27 = scalar_lea.hbm %s3946_s3, 8192 }
  0x13   :  { %s37_s24 = sshll.u32 %s3711_s23, 4  ;;  %p3683_p8 = scmp.ne.s32.totalorder %s3946_s3, %s3682_s27  ;;  %s38_s24 = int_to_ptr.vmem [resolvable:$true] %s37_s24 }
  0x14   :  { %p3686_p9 = scmp.lt.u32.totalorder %s3682_s27, %s3946_s3 }
  0x16   :  { %p3688_p10 = pnand %p3686_p9, %p3683_p8 }
  0x18   :  { %3691 = shalt.err (!%p3688_p10)
}
  0x19   :  { %s3692_s12 = scalar_lea.vmem %s38_s24, 8192  ;;  %p3697_p12 = scmp.lt.s32.totalorder %s38_s24, %s38_s24 }
  0x1a   :  { %p3693_p11 = scmp.ne.s32.totalorder %s38_s24, %s3692_s12  ;;  %p3698_p13 = scmp.lt.s32.totalorder %s3692_s12, %s3692_s12 }
  0x1c   :  { %p3699_p0 = por %p3698_p13, %p3697_p12 }
  0x1e   :  { %p3700_p1 = pnand %p3699_p0, %p3693_p11 }
  0x20   :  { %3703 = shalt.err (!%p3700_p1)
}
  0x21   :  { %s3712_s1 = smov 128   ;;  %s3713_s10 = smov 8  }
  0x22   :  { %43 = dma.hbm_to_vmem [thread:$0]  %s3946_s3, 8192, %s38_s24, [#allocation5], %s3712_s1, %s3712_s1, %s3713_s10  }
  0x23   :  { %3704 = dma.done.wait [#allocation3], 32768  }
  0x24   :  { %3705 = vsyncadd [#allocation3], 4294934528 }
  0x25   :  { %3706 = dma.done.wait [#allocation5], 8192  }
  0x26   :  { %3707 = vsyncadd [#allocation5], 4294959104  ;;  %v3156_v0 = vld [vmem:[#allocation2 + $0x4] ss:$16 sps:$4 sm:$0xff]   ;;  %v3160_v2 = vld [vmem:[#allocation2] ss:$16 sps:$4 sm:$0xff]  }
  0x27   :  { %v3158_v1 = vld [vmem:[#allocation2 + $0x204] ss:$16 sps:$4 sm:$0xff]   ;;  %1635 = vmatprep.subr.bf16.mxu1 %v3156_v0  ;;  %v3161_v3 = vld [vmem:[#allocation2 + $0x200] ss:$16 sps:$4 sm:$0xff]   ;;  %v62_v46 = vld [vmem:[%s3943_s0 + $0x8] sm:$0xff]  ;;  %vm3715_vm0 = vmmov 0  }
  0x28   :  { %1676 = vmatprep.subr.bf16.mxu0 %v3158_v1  ;;  %v3162_v4 = vld [vmem:[#allocation2 + $0x24] ss:$16 sps:$4 sm:$0xff]   ;;  %1636 = vmatpush1.bf16.msra.mxu1 %v3160_v2  ;;  %v3166_v6 = vld [vmem:[#allocation2 + $0x20] ss:$16 sps:$4 sm:$0xff]   ;;  %v3793_v48 = vpack.c.bf16 %v62_v46, %v62_v46  ;;  %v64_v49 = vld [vmem:[%s3943_s0 + $0x18] sm:$0xff]  ;;  %vm2669_vm1 = vcmask 523264  }
  0x29   :  { %1677 = vmatpush1.bf16.msra.mxu0 %v3161_v3  ;;  %v3164_v5 = vld [vmem:[#allocation2 + $0x224] ss:$16 sps:$4 sm:$0xff]   ;;  %1637 = vmatprep.subr.bf16.mxu1 %v3162_v4  ;;  %v3167_v7 = vld [vmem:[#allocation2 + $0x220] ss:$16 sps:$4 sm:$0xff]   ;;  %v3798_v52 = vpack.c.bf16 %v64_v49, %v64_v49  ;;  %v3309_v49 = vld [vmem:[#allocation2 + $0x128] ss:$16 sps:$4 sm:$0xff]  }
  0x2a   :  { %1678 = vmatprep.subr.bf16.mxu0 %v3164_v5  ;;  %v3168_v8 = vld [vmem:[#allocation2 + $0x44] ss:$16 sps:$4 sm:$0xff]   ;;  %v3172_v10 = vld [vmem:[#allocation2 + $0x40] ss:$16 sps:$4 sm:$0xff]   ;;  %1667 = vmatprep.mubr.bf16.mxu1 %v3793_v48 }
  0x2b   :  { %v3170_v9 = vld [vmem:[#allocation2 + $0x244] ss:$16 sps:$4 sm:$0xff]   ;;  %v3173_v11 = vld [vmem:[#allocation2 + $0x240] ss:$16 sps:$4 sm:$0xff]   ;;  %1708 = vmatprep.mubr.bf16.mxu0 %v3798_v52 }
  0x2c   :  { %1638 = vmatpush1.bf16.msra.mxu1 %v3166_v6  ;;  %v3174_v12 = vld [vmem:[#allocation2 + $0x64] ss:$16 sps:$4 sm:$0xff]   ;;  %v3178_v14 = vld [vmem:[#allocation2 + $0x60] ss:$16 sps:$4 sm:$0xff]  }
  0x2d   :  { %1679 = vmatpush1.bf16.msra.mxu0 %v3167_v7  ;;  %1639 = vmatprep.subr.bf16.mxu1 %v3168_v8  ;;  %v3176_v13 = vld [vmem:[#allocation2 + $0x264] ss:$16 sps:$4 sm:$0xff]   ;;  %v3179_v15 = vld [vmem:[#allocation2 + $0x260] ss:$16 sps:$4 sm:$0xff]   ;;  %v3257_v7 = vld [vmem:[#allocation2 + $0xc] ss:$16 sps:$4 sm:$0xff]  }
  0x2e   :  { %1680 = vmatprep.subr.bf16.mxu0 %v3170_v9  ;;  %v3180_v16 = vld [vmem:[#allocation2 + $0x84] ss:$16 sps:$4 sm:$0xff]   ;;  %v3184_v18 = vld [vmem:[#allocation2 + $0x80] ss:$16 sps:$4 sm:$0xff]  }
  0x2f   :  { %v3182_v17 = vld [vmem:[#allocation2 + $0x284] ss:$16 sps:$4 sm:$0xff]   ;;  %v3185_v19 = vld [vmem:[#allocation2 + $0x280] ss:$16 sps:$4 sm:$0xff]  }
  0x30   :  { %1640 = vmatpush1.bf16.msra.mxu1 %v3172_v10  ;;  %v3186_v20 = vld [vmem:[#allocation2 + $0xa4] ss:$16 sps:$4 sm:$0xff]   ;;  %v3190_v22 = vld [vmem:[#allocation2 + $0xa0] ss:$16 sps:$4 sm:$0xff]   ;;  %v3255_v10 = vld [vmem:[#allocation2 + $0x8] ss:$16 sps:$4 sm:$0xff]  }
  0x31   :  { %1681 = vmatpush1.bf16.msra.mxu0 %v3173_v11  ;;  %1641 = vmatprep.subr.bf16.mxu1 %v3174_v12  ;;  %v3188_v21 = vld [vmem:[#allocation2 + $0x2a4] ss:$16 sps:$4 sm:$0xff]   ;;  %v3191_v23 = vld [vmem:[#allocation2 + $0x2a0] ss:$16 sps:$4 sm:$0xff]  }
  0x32   :  { %1682 = vmatprep.subr.bf16.mxu0 %v3176_v13  ;;  %v3192_v24 = vld [vmem:[#allocation2 + $0xc4] ss:$16 sps:$4 sm:$0xff]   ;;  %v3196_v26 = vld [vmem:[#allocation2 + $0xc0] ss:$16 sps:$4 sm:$0xff]   ;;  %v3263_v13 = vld [vmem:[#allocation2 + $0x2c] ss:$16 sps:$4 sm:$0xff]  }
  0x33   :  { %v3194_v25 = vld [vmem:[#allocation2 + $0x2c4] ss:$16 sps:$4 sm:$0xff]   ;;  %v3197_v27 = vld [vmem:[#allocation2 + $0x2c0] ss:$16 sps:$4 sm:$0xff]  }
  0x34   :  { %1642 = vmatpush1.bf16.msra.mxu1 %v3178_v14  ;;  %v3198_v28 = vld [vmem:[#allocation2 + $0xe4] ss:$16 sps:$4 sm:$0xff]   ;;  %v3202_v30 = vld [vmem:[#allocation2 + $0xe0] ss:$16 sps:$4 sm:$0xff]  }
  0x35   :  { %1683 = vmatpush1.bf16.msra.mxu0 %v3179_v15  ;;  %1643 = vmatprep.subr.bf16.mxu1 %v3180_v16  ;;  %v3200_v29 = vld [vmem:[#allocation2 + $0x2e4] ss:$16 sps:$4 sm:$0xff]   ;;  %v3203_v31 = vld [vmem:[#allocation2 + $0x2e0] ss:$16 sps:$4 sm:$0xff]   ;;  %v3261_v15 = vld [vmem:[#allocation2 + $0x28] ss:$16 sps:$4 sm:$0xff]  }
  0x36   :  { %1684 = vmatprep.subr.bf16.mxu0 %v3182_v17  ;;  %v3204_v32 = vld [vmem:[#allocation2 + $0x104] ss:$16 sps:$4 sm:$0xff]   ;;  %v3208_v34 = vld [vmem:[#allocation2 + $0x100] ss:$16 sps:$4 sm:$0xff]   ;;  %v3269_v17 = vld [vmem:[#allocation2 + $0x4c] ss:$16 sps:$4 sm:$0xff]  }
  0x37   :  { %v3206_v33 = vld [vmem:[#allocation2 + $0x304] ss:$16 sps:$4 sm:$0xff]   ;;  %v3209_v35 = vld [vmem:[#allocation2 + $0x300] ss:$16 sps:$4 sm:$0xff]  }
  0x38   :  { %1644 = vmatpush1.bf16.msra.mxu1 %v3184_v18  ;;  %v3210_v36 = vld [vmem:[#allocation2 + $0x124] ss:$16 sps:$4 sm:$0xff]   ;;  %v3214_v38 = vld [vmem:[#allocation2 + $0x120] ss:$16 sps:$4 sm:$0xff]  }
  0x39   :  { %1685 = vmatpush1.bf16.msra.mxu0 %v3185_v19  ;;  %1645 = vmatprep.subr.bf16.mxu1 %v3186_v20  ;;  %v3212_v37 = vld [vmem:[#allocation2 + $0x324] ss:$16 sps:$4 sm:$0xff]   ;;  %v3215_v39 = vld [vmem:[#allocation2 + $0x320] ss:$16 sps:$4 sm:$0xff]   ;;  %v3267_v19 = vld [vmem:[#allocation2 + $0x48] ss:$16 sps:$4 sm:$0xff]  }
  0x3a   :  { %1686 = vmatprep.subr.bf16.mxu0 %v3188_v21  ;;  %v3216_v40 = vld [vmem:[#allocation2 + $0x144] ss:$16 sps:$4 sm:$0xff]   ;;  %v3220_v42 = vld [vmem:[#allocation2 + $0x140] ss:$16 sps:$4 sm:$0xff]   ;;  %v3275_v21 = vld [vmem:[#allocation2 + $0x6c] ss:$16 sps:$4 sm:$0xff]  }
  0x3b   :  { %v3218_v41 = vld [vmem:[#allocation2 + $0x344] ss:$16 sps:$4 sm:$0xff]   ;;  %v3221_v43 = vld [vmem:[#allocation2 + $0x340] ss:$16 sps:$4 sm:$0xff]  }
  0x3c   :  { %1646 = vmatpush1.bf16.msra.mxu1 %v3190_v22  ;;  %v3222_v44 = vld [vmem:[#allocation2 + $0x164] ss:$16 sps:$4 sm:$0xff]   ;;  %v3226_v47 = vld [vmem:[#allocation2 + $0x160] ss:$16 sps:$4 sm:$0xff]  }
  0x3d   :  { %1687 = vmatpush1.bf16.msra.mxu0 %v3191_v23  ;;  %1647 = vmatprep.subr.bf16.mxu1 %v3192_v24  ;;  %v3224_v45 = vld [vmem:[#allocation2 + $0x364] ss:$16 sps:$4 sm:$0xff]   ;;  %v3227_v50 = vld [vmem:[#allocation2 + $0x360] ss:$16 sps:$4 sm:$0xff]   ;;  %v3273_v23 = vld [vmem:[#allocation2 + $0x68] ss:$16 sps:$4 sm:$0xff]  }
  0x3e   :  { %1688 = vmatprep.subr.bf16.mxu0 %v3194_v25  ;;  %v3228_v51 = vld [vmem:[#allocation2 + $0x184] ss:$16 sps:$4 sm:$0xff]   ;;  %v3232_v54 = vld [vmem:[#allocation2 + $0x180] ss:$16 sps:$4 sm:$0xff]   ;;  %v3281_v25 = vld [vmem:[#allocation2 + $0x8c] ss:$16 sps:$4 sm:$0xff]  }
  0x3f   :  { %v3230_v53 = vld [vmem:[#allocation2 + $0x384] ss:$16 sps:$4 sm:$0xff]   ;;  %v3233_v55 = vld [vmem:[#allocation2 + $0x380] ss:$16 sps:$4 sm:$0xff]  }
  0x40   :  { %1648 = vmatpush1.bf16.msra.mxu1 %v3196_v26  ;;  %v3234_v56 = vld [vmem:[#allocation2 + $0x1a4] ss:$16 sps:$4 sm:$0xff]   ;;  %v3238_v58 = vld [vmem:[#allocation2 + $0x1a0] ss:$16 sps:$4 sm:$0xff]  }
  0x41   :  { %1689 = vmatpush1.bf16.msra.mxu0 %v3197_v27  ;;  %1649 = vmatprep.subr.bf16.mxu1 %v3198_v28  ;;  %v3236_v57 = vld [vmem:[#allocation2 + $0x3a4] ss:$16 sps:$4 sm:$0xff]   ;;  %v3239_v59 = vld [vmem:[#allocation2 + $0x3a0] ss:$16 sps:$4 sm:$0xff]   ;;  %v3279_v27 = vld [vmem:[#allocation2 + $0x88] ss:$16 sps:$4 sm:$0xff]  }
  0x42   :  { %1690 = vmatprep.subr.bf16.mxu0 %v3200_v29  ;;  %v3240_v60 = vld [vmem:[#allocation2 + $0x1c4] ss:$16 sps:$4 sm:$0xff]   ;;  %v3244_v62 = vld [vmem:[#allocation2 + $0x1c0] ss:$16 sps:$4 sm:$0xff]   ;;  %v3287_v29 = vld [vmem:[#allocation2 + $0xac] ss:$16 sps:$4 sm:$0xff]  }
  0x43   :  { %v3242_v61 = vld [vmem:[#allocation2 + $0x3c4] ss:$16 sps:$4 sm:$0xff]   ;;  %v3245_v63 = vld [vmem:[#allocation2 + $0x3c0] ss:$16 sps:$4 sm:$0xff]  }
  0x44   :  { %1650 = vmatpush1.bf16.msra.mxu1 %v3202_v30  ;;  %v3246_v0 = vld [vmem:[#allocation2 + $0x1e4] ss:$16 sps:$4 sm:$0xff]   ;;  %v3250_v2 = vld [vmem:[#allocation2 + $0x1e0] ss:$16 sps:$4 sm:$0xff]  }
  0x45   :  { %1691 = vmatpush1.bf16.msra.mxu0 %v3203_v31  ;;  %1651 = vmatprep.subr.bf16.mxu1 %v3204_v32  ;;  %v3248_v1 = vld [vmem:[#allocation2 + $0x3e4] ss:$16 sps:$4 sm:$0xff]   ;;  %v3251_v3 = vld [vmem:[#allocation2 + $0x3e0] ss:$16 sps:$4 sm:$0xff]   ;;  %v3285_v31 = vld [vmem:[#allocation2 + $0xa8] ss:$16 sps:$4 sm:$0xff]  }
  0x46   :  { %1692 = vmatprep.subr.bf16.mxu0 %v3206_v33  ;;  %v61_v4 = vld [vmem:[%s3943_s0] sm:$0xff]  ;;  %v63_v6 = vld [vmem:[%s3943_s0 + $0x10] sm:$0xff]  ;;  %v3293_v33 = vld [vmem:[#allocation2 + $0xcc] ss:$16 sps:$4 sm:$0xff]  }
  0x47   :  { %v3254_v5 = vld [vmem:[#allocation2 + $0x404] ss:$16 sps:$4 sm:$0xff]   ;;  %v3808_v8 = vpack.c.bf16 %v61_v4, %v61_v4  ;;  %v3252_v9 = vld [vmem:[#allocation2 + $0x400] ss:$16 sps:$4 sm:$0xff]   ;;  %v3810_v11 = vpack.c.bf16 %v63_v6, %v63_v6  ;;  %v3341_v4 = vld [vmem:[#allocation2 + $0x1cc] ss:$16 sps:$4 sm:$0xff]  }
  0x48   :  { %1652 = vmatpush1.bf16.msra.mxu1 %v3208_v34  ;;  %v3260_v12 = vld [vmem:[#allocation2 + $0x424] ss:$16 sps:$4 sm:$0xff]   ;;  %v3258_v14 = vld [vmem:[#allocation2 + $0x420] ss:$16 sps:$4 sm:$0xff]   ;;  %v66_v34 = vld [vmem:[%s3943_s0 + $0x28] sm:$0xff] }
  0x49   :  { %1693 = vmatpush1.bf16.msra.mxu0 %v3209_v35  ;;  %1653 = vmatprep.subr.bf16.mxu1 %v3210_v36  ;;  %v3266_v16 = vld [vmem:[#allocation2 + $0x444] ss:$16 sps:$4 sm:$0xff]   ;;  %v3264_v18 = vld [vmem:[#allocation2 + $0x440] ss:$16 sps:$4 sm:$0xff]   ;;  %v3818_v36 = vpack.c.bf16 %v66_v34, %v66_v34  ;;  %v3339_v6 = vld [vmem:[#allocation2 + $0x1c8] ss:$16 sps:$4 sm:$0xff]  }
  0x4a   :  { %1694 = vmatprep.subr.bf16.mxu0 %v3212_v37  ;;  %v3272_v20 = vld [vmem:[#allocation2 + $0x464] ss:$16 sps:$4 sm:$0xff]   ;;  %v3270_v22 = vld [vmem:[#allocation2 + $0x460] ss:$16 sps:$4 sm:$0xff]   ;;  %v3291_v37 = vld [vmem:[#allocation2 + $0xc8] ss:$16 sps:$4 sm:$0xff]  }
  0x4b   :  { %v3278_v24 = vld [vmem:[#allocation2 + $0x484] ss:$16 sps:$4 sm:$0xff]   ;;  %v3276_v26 = vld [vmem:[#allocation2 + $0x480] ss:$16 sps:$4 sm:$0xff]  }
  0x4c   :  { %1654 = vmatpush1.bf16.msra.mxu1 %v3214_v38  ;;  %v3284_v28 = vld [vmem:[#allocation2 + $0x4a4] ss:$16 sps:$4 sm:$0xff]   ;;  %v3282_v30 = vld [vmem:[#allocation2 + $0x4a0] ss:$16 sps:$4 sm:$0xff]  }
  0x4d   :  { %1695 = vmatpush1.bf16.msra.mxu0 %v3215_v39  ;;  %1655 = vmatprep.subr.bf16.mxu1 %v3216_v40  ;;  %v3290_v32 = vld [vmem:[#allocation2 + $0x4c4] ss:$16 sps:$4 sm:$0xff]   ;;  %v3288_v35 = vld [vmem:[#allocation2 + $0x4c0] ss:$16 sps:$4 sm:$0xff]   ;;  %v3299_v39 = vld [vmem:[#allocation2 + $0xec] ss:$16 sps:$4 sm:$0xff]  }
  0x4e   :  { %1696 = vmatprep.subr.bf16.mxu0 %v3218_v41  ;;  %v3296_v38 = vld [vmem:[#allocation2 + $0x4e4] ss:$16 sps:$4 sm:$0xff]   ;;  %v3294_v40 = vld [vmem:[#allocation2 + $0x4e0] ss:$16 sps:$4 sm:$0xff]   ;;  %v3297_v41 = vld [vmem:[#allocation2 + $0xe8] ss:$16 sps:$4 sm:$0xff]  }
  0x4f   :  { %v3308_v46 = vld [vmem:[#allocation2 + $0x524] ss:$16 sps:$4 sm:$0xff]   ;;  %v3372_v34 = vld [vmem:[#allocation2 + $0x680] ss:$16 sps:$4 sm:$0xff]  }
  0x50   :  { %1656 = vmatpush1.bf16.msra.mxu1 %v3220_v42  ;;  %v3302_v42 = vld [vmem:[#allocation2 + $0x504] ss:$16 sps:$4 sm:$0xff]  }
  0x51   :  { %1697 = vmatpush1.bf16.msra.mxu0 %v3221_v43  ;;  %1657 = vmatprep.subr.bf16.mxu1 %v3222_v44  ;;  %v3305_v43 = vld [vmem:[#allocation2 + $0x10c] ss:$16 sps:$4 sm:$0xff]   ;;  %v3300_v44 = vld [vmem:[#allocation2 + $0x500] ss:$16 sps:$4 sm:$0xff]  }
  0x52   :  { %1698 = vmatprep.subr.bf16.mxu0 %v3224_v45  ;;  %v3303_v45 = vld [vmem:[#allocation2 + $0x108] ss:$16 sps:$4 sm:$0xff]  }
  0x54   :  { %1658 = vmatpush1.bf16.msra.mxu1 %v3226_v47  ;;  %v3311_v47 = vld [vmem:[#allocation2 + $0x12c] ss:$16 sps:$4 sm:$0xff]  }
  0x55   :  { %1699 = vmatpush1.bf16.msra.mxu0 %v3227_v50  ;;  %1659 = vmatprep.subr.bf16.mxu1 %v3228_v51  ;;  %v3314_v50 = vld [vmem:[#allocation2 + $0x544] ss:$16 sps:$4 sm:$0xff]   ;;  %v3317_v51 = vld [vmem:[#allocation2 + $0x14c] ss:$16 sps:$4 sm:$0xff]  }
  0x56   :  { %1700 = vmatprep.subr.bf16.mxu0 %v3230_v53  ;;  %v3312_v53 = vld [vmem:[#allocation2 + $0x540] ss:$16 sps:$4 sm:$0xff]  }
  0x58   :  { %1660 = vmatpush1.bf16.msra.mxu1 %v3232_v54  ;;  %v3315_v54 = vld [vmem:[#allocation2 + $0x148] ss:$16 sps:$4 sm:$0xff]  }
  0x59   :  { %1701 = vmatpush1.bf16.msra.mxu0 %v3233_v55  ;;  %1661 = vmatprep.subr.bf16.mxu1 %v3234_v56  ;;  %v3320_v55 = vld [vmem:[#allocation2 + $0x564] ss:$16 sps:$4 sm:$0xff]   ;;  %v3323_v56 = vld [vmem:[#allocation2 + $0x16c] ss:$16 sps:$4 sm:$0xff]  }
  0x5a   :  { %1702 = vmatprep.subr.bf16.mxu0 %v3236_v57  ;;  %v3318_v57 = vld [vmem:[#allocation2 + $0x560] ss:$16 sps:$4 sm:$0xff]  }
  0x5c   :  { %1662 = vmatpush1.bf16.msra.mxu1 %v3238_v58  ;;  %v3321_v58 = vld [vmem:[#allocation2 + $0x168] ss:$16 sps:$4 sm:$0xff]  }
  0x5d   :  { %1703 = vmatpush1.bf16.msra.mxu0 %v3239_v59  ;;  %1663 = vmatprep.subr.bf16.mxu1 %v3240_v60  ;;  %v3326_v59 = vld [vmem:[#allocation2 + $0x584] ss:$16 sps:$4 sm:$0xff]   ;;  %v3329_v60 = vld [vmem:[#allocation2 + $0x18c] ss:$16 sps:$4 sm:$0xff]  }
  0x5e   :  { %1704 = vmatprep.subr.bf16.mxu0 %v3242_v61  ;;  %v3324_v61 = vld [vmem:[#allocation2 + $0x580] ss:$16 sps:$4 sm:$0xff]  }
  0x60   :  { %1664 = vmatpush1.bf16.msra.mxu1 %v3244_v62  ;;  %v3327_v62 = vld [vmem:[#allocation2 + $0x188] ss:$16 sps:$4 sm:$0xff]  }
  0x61   :  { %1705 = vmatpush1.bf16.msra.mxu0 %v3245_v63  ;;  %1665 = vmatprep.subr.bf16.mxu1 %v3246_v0  ;;  %v3332_v63 = vld [vmem:[#allocation2 + $0x5a4] ss:$16 sps:$4 sm:$0xff]   ;;  %v3335_v0 = vld [vmem:[#allocation2 + $0x1ac] ss:$16 sps:$4 sm:$0xff]  }
  0x62   :  { %1706 = vmatprep.subr.bf16.mxu0 %v3248_v1  ;;  %v3330_v1 = vld [vmem:[#allocation2 + $0x5a0] ss:$16 sps:$4 sm:$0xff]  }
  0x64   :  { %1666 = vmatpush1.bf16.msra.mxu1 %v3250_v2  ;;  %v3333_v2 = vld [vmem:[#allocation2 + $0x1a8] ss:$16 sps:$4 sm:$0xff]  }
  0x65   :  { %1707 = vmatpush1.bf16.msra.mxu0 %v3251_v3  ;;  %1799 = vmatprep.subr.bf16.mxu1 %v3257_v7  ;;  %v3338_v3 = vld [vmem:[#allocation2 + $0x5c4] ss:$16 sps:$4 sm:$0xff]  }
  0x66   :  { %1717 = vmatprep.subr.bf16.mxu0 %v3254_v5  ;;  %v3336_v5 = vld [vmem:[#allocation2 + $0x5c0] ss:$16 sps:$4 sm:$0xff]   ;;  %v3344_v7 = vld [vmem:[#allocation2 + $0x5e4] ss:$16 sps:$4 sm:$0xff]  }
  0x67   :  { %1668 = vmatmul.mubr.bf16.vlgmr.msra.gmra.mrb[0].mxu1 %v3808_v8 }
  0x68   :  { %1709 = vmatmul.mubr.bf16.vlgmr.msra.gmra.mrb[0].mxu0 %v3810_v11  ;;  %1800 = vmatpush1.bf16.msra.mxu1 %v3255_v10  ;;  %v3342_v10 = vld [vmem:[#allocation2 + $0x5e0] ss:$16 sps:$4 sm:$0xff]  }
  0x69   :  { %1718 = vmatpush1.bf16.msra.mxu0 %v3252_v9  ;;  %1801 = vmatprep.subr.bf16.mxu1 %v3263_v13  ;;  %v3347_v9 = vld [vmem:[#allocation2 + $0x1ec] ss:$16 sps:$4 sm:$0xff]   ;;  %v65_v13 = vld [vmem:[%s3943_s0 + $0x20] sm:$0xff] }
  0x6a   :  { %1719 = vmatprep.subr.bf16.mxu0 %v3260_v12  ;;  %1831 = vmatprep.mubr.bf16.mxu1 %v3793_v48  ;;  %v3306_v48 = vld [vmem:[#allocation2 + $0x520] ss:$16 sps:$4 sm:$0xff]   ;;  %v3345_v12 = vld [vmem:[#allocation2 + $0x1e8] ss:$16 sps:$4 sm:$0xff]  }
  0x6b   :  { %1749 = vmatprep.mubr.bf16.mxu0 %v3818_v36 }
  0x6c   :  { %1802 = vmatpush1.bf16.msra.mxu1 %v3261_v15  ;;  %v3353_v15 = vld [vmem:[#allocation2 + $0x20c] ss:$16 sps:$4 sm:$0xff]  }
  0x6d   :  { %1720 = vmatpush1.bf16.msra.mxu0 %v3258_v14  ;;  %1803 = vmatprep.subr.bf16.mxu1 %v3269_v17  ;;  %v3350_v14 = vld [vmem:[#allocation2 + $0x604] ss:$16 sps:$4 sm:$0xff]   ;;  %v3348_v17 = vld [vmem:[#allocation2 + $0x600] ss:$16 sps:$4 sm:$0xff]  }
  0x6e   :  { %1721 = vmatprep.subr.bf16.mxu0 %v3266_v16  ;;  %v3824_v16 = vpack.c.bf16 %v65_v13, %v65_v13  ;;  %v3432_v13 = vld [vmem:[#allocation2 + $0x7c0] ss:$16 sps:$4 sm:$0xff]  }
  0x70   :  { %1804 = vmatpush1.bf16.msra.mxu1 %v3267_v19  ;;  %v3356_v19 = vld [vmem:[#allocation2 + $0x624] ss:$16 sps:$4 sm:$0xff]  }
  0x71   :  { %1722 = vmatpush1.bf16.msra.mxu0 %v3264_v18  ;;  %1805 = vmatprep.subr.bf16.mxu1 %v3275_v21  ;;  %v3351_v18 = vld [vmem:[#allocation2 + $0x208] ss:$16 sps:$4 sm:$0xff]  }
  0x72   :  { %1723 = vmatprep.subr.bf16.mxu0 %v3272_v20  ;;  %v3359_v20 = vld [vmem:[#allocation2 + $0x22c] ss:$16 sps:$4 sm:$0xff]  }
  0x73   :  { %v68_v21 = vld [vmem:[%s3943_s0 + $0x38] sm:$0xff] }
  0x74   :  { %1806 = vmatpush1.bf16.msra.mxu1 %v3273_v23  ;;  %v3357_v23 = vld [vmem:[#allocation2 + $0x228] ss:$16 sps:$4 sm:$0xff]  }
  0x75   :  { %1724 = vmatpush1.bf16.msra.mxu0 %v3270_v22  ;;  %1807 = vmatprep.subr.bf16.mxu1 %v3281_v25  ;;  %v3354_v22 = vld [vmem:[#allocation2 + $0x620] ss:$16 sps:$4 sm:$0xff]   ;;  %v3362_v25 = vld [vmem:[#allocation2 + $0x644] ss:$16 sps:$4 sm:$0xff]  }
  0x76   :  { %1725 = vmatprep.subr.bf16.mxu0 %v3278_v24  ;;  %v3831_v24 = vpack.c.bf16 %v68_v21, %v68_v21  ;;  %v3446_v21 = vld [vmem:[#allocation2 + $0x40c] ss:$16 sps:$4 sm:$0xff]  }
  0x78   :  { %1808 = vmatpush1.bf16.msra.mxu1 %v3279_v27  ;;  %v3360_v27 = vld [vmem:[#allocation2 + $0x640] ss:$16 sps:$4 sm:$0xff]  }
  0x79   :  { %1726 = vmatpush1.bf16.msra.mxu0 %v3276_v26  ;;  %1809 = vmatprep.subr.bf16.mxu1 %v3287_v29  ;;  %v3365_v26 = vld [vmem:[#allocation2 + $0x24c] ss:$16 sps:$4 sm:$0xff]   ;;  %v3368_v29 = vld [vmem:[#allocation2 + $0x664] ss:$16 sps:$4 sm:$0xff]  }
  0x7a   :  { %1727 = vmatprep.subr.bf16.mxu0 %v3284_v28  ;;  %v3363_v28 = vld [vmem:[#allocation2 + $0x248] ss:$16 sps:$4 sm:$0xff]  }
  0x7c   :  { %1810 = vmatpush1.bf16.msra.mxu1 %v3285_v31  ;;  %v3369_v31 = vld [vmem:[#allocation2 + $0x268] ss:$16 sps:$4 sm:$0xff]  }
  0x7d   :  { %1728 = vmatpush1.bf16.msra.mxu0 %v3282_v30  ;;  %1811 = vmatprep.subr.bf16.mxu1 %v3293_v33  ;;  %v3366_v30 = vld [vmem:[#allocation2 + $0x660] ss:$16 sps:$4 sm:$0xff]   ;;  %v3377_v33 = vld [vmem:[#allocation2 + $0x28c] ss:$16 sps:$4 sm:$0xff]  }
  0x7e   :  { %1729 = vmatprep.subr.bf16.mxu0 %v3290_v32  ;;  %v3374_v32 = vld [vmem:[#allocation2 + $0x684] ss:$16 sps:$4 sm:$0xff]  }
  0x80   :  { %1812 = vmatpush1.bf16.msra.mxu1 %v3291_v37  ;;  %v3383_v37 = vld [vmem:[#allocation2 + $0x2ac] ss:$16 sps:$4 sm:$0xff]  }
  0x81   :  { %1730 = vmatpush1.bf16.msra.mxu0 %v3288_v35  ;;  %1813 = vmatprep.subr.bf16.mxu1 %v3299_v39  ;;  %v3375_v35 = vld [vmem:[#allocation2 + $0x288] ss:$16 sps:$4 sm:$0xff]  }
  0x82   :  { %1731 = vmatprep.subr.bf16.mxu0 %v3296_v38  ;;  %v3378_v38 = vld [vmem:[#allocation2 + $0x6a0] ss:$16 sps:$4 sm:$0xff]   ;;  %v3381_v39 = vld [vmem:[#allocation2 + $0x2a8] ss:$16 sps:$4 sm:$0xff]  }
  0x84   :  { %1814 = vmatpush1.bf16.msra.mxu1 %v3297_v41  ;;  %v3389_v41 = vld [vmem:[#allocation2 + $0x2cc] ss:$16 sps:$4 sm:$0xff]  }
  0x85   :  { %1732 = vmatpush1.bf16.msra.mxu0 %v3294_v40  ;;  %1815 = vmatprep.subr.bf16.mxu1 %v3305_v43  ;;  %v3386_v40 = vld [vmem:[#allocation2 + $0x6c4] ss:$16 sps:$4 sm:$0xff]   ;;  %v3387_v43 = vld [vmem:[#allocation2 + $0x2c8] ss:$16 sps:$4 sm:$0xff]  }
  0x86   :  { %1733 = vmatprep.subr.bf16.mxu0 %v3302_v42  ;;  %v3384_v42 = vld [vmem:[#allocation2 + $0x6c0] ss:$16 sps:$4 sm:$0xff]  }
  0x88   :  { %1816 = vmatpush1.bf16.msra.mxu1 %v3303_v45  ;;  %v3395_v45 = vld [vmem:[#allocation2 + $0x2ec] ss:$16 sps:$4 sm:$0xff]  }
  0x89   :  { %1734 = vmatpush1.bf16.msra.mxu0 %v3300_v44  ;;  %1817 = vmatprep.subr.bf16.mxu1 %v3311_v47  ;;  %v3392_v44 = vld [vmem:[#allocation2 + $0x6e4] ss:$16 sps:$4 sm:$0xff]   ;;  %v3393_v47 = vld [vmem:[#allocation2 + $0x2e8] ss:$16 sps:$4 sm:$0xff]  }
  0x8a   :  { %1735 = vmatprep.subr.bf16.mxu0 %v3308_v46  ;;  %v3390_v46 = vld [vmem:[#allocation2 + $0x6e0] ss:$16 sps:$4 sm:$0xff]  }
  0x8c   :  { %1818 = vmatpush1.bf16.msra.mxu1 %v3309_v49  ;;  %v3401_v49 = vld [vmem:[#allocation2 + $0x30c] ss:$16 sps:$4 sm:$0xff]  }
  0x8d   :  { %1736 = vmatpush1.bf16.msra.mxu0 %v3306_v48  ;;  %1819 = vmatprep.subr.bf16.mxu1 %v3317_v51  ;;  %v3398_v48 = vld [vmem:[#allocation2 + $0x704] ss:$16 sps:$4 sm:$0xff]   ;;  %v3399_v51 = vld [vmem:[#allocation2 + $0x308] ss:$16 sps:$4 sm:$0xff]  }
  0x8e   :  { %1737 = vmatprep.subr.bf16.mxu0 %v3314_v50  ;;  %v3396_v50 = vld [vmem:[#allocation2 + $0x700] ss:$16 sps:$4 sm:$0xff]  }
  0x90   :  { %1820 = vmatpush1.bf16.msra.mxu1 %v3315_v54  ;;  %v3407_v54 = vld [vmem:[#allocation2 + $0x32c] ss:$16 sps:$4 sm:$0xff]  }
  0x91   :  { %1738 = vmatpush1.bf16.msra.mxu0 %v3312_v53  ;;  %1821 = vmatprep.subr.bf16.mxu1 %v3323_v56  ;;  %v3404_v53 = vld [vmem:[#allocation2 + $0x724] ss:$16 sps:$4 sm:$0xff]   ;;  %v3405_v56 = vld [vmem:[#allocation2 + $0x328] ss:$16 sps:$4 sm:$0xff]  }
  0x92   :  { %1739 = vmatprep.subr.bf16.mxu0 %v3320_v55  ;;  %v3402_v55 = vld [vmem:[#allocation2 + $0x720] ss:$16 sps:$4 sm:$0xff]  }
  0x94   :  { %1822 = vmatpush1.bf16.msra.mxu1 %v3321_v58  ;;  %v3413_v58 = vld [vmem:[#allocation2 + $0x34c] ss:$16 sps:$4 sm:$0xff]  }
  0x95   :  { %1740 = vmatpush1.bf16.msra.mxu0 %v3318_v57  ;;  %1823 = vmatprep.subr.bf16.mxu1 %v3329_v60  ;;  %v3410_v57 = vld [vmem:[#allocation2 + $0x744] ss:$16 sps:$4 sm:$0xff]   ;;  %v3411_v60 = vld [vmem:[#allocation2 + $0x348] ss:$16 sps:$4 sm:$0xff]  }
  0x96   :  { %1741 = vmatprep.subr.bf16.mxu0 %v3326_v59  ;;  %v3408_v59 = vld [vmem:[#allocation2 + $0x740] ss:$16 sps:$4 sm:$0xff]  }
  0x98   :  { %1824 = vmatpush1.bf16.msra.mxu1 %v3327_v62  ;;  %v3419_v62 = vld [vmem:[#allocation2 + $0x36c] ss:$16 sps:$4 sm:$0xff]  }
  0x99   :  { %1742 = vmatpush1.bf16.msra.mxu0 %v3324_v61  ;;  %1825 = vmatprep.subr.bf16.mxu1 %v3335_v0  ;;  %v3416_v61 = vld [vmem:[#allocation2 + $0x764] ss:$16 sps:$4 sm:$0xff]   ;;  %v3417_v0 = vld [vmem:[#allocation2 + $0x368] ss:$16 sps:$4 sm:$0xff]  }
  0x9a   :  { %1743 = vmatprep.subr.bf16.mxu0 %v3332_v63  ;;  %v3414_v63 = vld [vmem:[#allocation2 + $0x760] ss:$16 sps:$4 sm:$0xff]  }
  0x9c   :  { %1826 = vmatpush1.bf16.msra.mxu1 %v3333_v2  ;;  %v3425_v2 = vld [vmem:[#allocation2 + $0x38c] ss:$16 sps:$4 sm:$0xff]  }
  0x9d   :  { %1744 = vmatpush1.bf16.msra.mxu0 %v3330_v1  ;;  %1827 = vmatprep.subr.bf16.mxu1 %v3341_v4  ;;  %v3422_v1 = vld [vmem:[#allocation2 + $0x784] ss:$16 sps:$4 sm:$0xff]   ;;  %v3423_v4 = vld [vmem:[#allocation2 + $0x388] ss:$16 sps:$4 sm:$0xff]  }
  0x9e   :  { %1745 = vmatprep.subr.bf16.mxu0 %v3338_v3  ;;  %v3420_v3 = vld [vmem:[#allocation2 + $0x780] ss:$16 sps:$4 sm:$0xff]  }
  0xa0   :  { %1828 = vmatpush1.bf16.msra.mxu1 %v3339_v6  ;;  %v3431_v6 = vld [vmem:[#allocation2 + $0x3ac] ss:$16 sps:$4 sm:$0xff]  }
  0xa1   :  { %1746 = vmatpush1.bf16.msra.mxu0 %v3336_v5  ;;  %1829 = vmatprep.subr.bf16.mxu1 %v3347_v9  ;;  %v3428_v5 = vld [vmem:[#allocation2 + $0x7a4] ss:$16 sps:$4 sm:$0xff]   ;;  %v3429_v9 = vld [vmem:[#allocation2 + $0x3a8] ss:$16 sps:$4 sm:$0xff]  }
  0xa2   :  { %1747 = vmatprep.subr.bf16.mxu0 %v3344_v7  ;;  %v3426_v7 = vld [vmem:[#allocation2 + $0x7a0] ss:$16 sps:$4 sm:$0xff]  }
  0xa4   :  { %1830 = vmatpush1.bf16.msra.mxu1 %v3345_v12  ;;  %v3437_v12 = vld [vmem:[#allocation2 + $0x3cc] ss:$16 sps:$4 sm:$0xff]  }
  0xa5   :  { %1748 = vmatpush1.bf16.msra.mxu0 %v3342_v10  ;;  %1840 = vmatprep.subr.bf16.mxu1 %v3353_v15  ;;  %v3434_v10 = vld [vmem:[#allocation2 + $0x7c4] ss:$16 sps:$4 sm:$0xff]  }
  0xa6   :  { %1758 = vmatprep.subr.bf16.mxu0 %v3350_v14  ;;  %v3435_v14 = vld [vmem:[#allocation2 + $0x3c8] ss:$16 sps:$4 sm:$0xff]   ;;  %v3440_v15 = vld [vmem:[#allocation2 + $0x7e4] ss:$16 sps:$4 sm:$0xff]  }
  0xa7   :  { %1832 = vmatmul.mubr.bf16.vlgmr.msra.gmra.mrb[4].mxu1 %v3808_v8  ;;  %v3371_v8 = vld [vmem:[#allocation2 + $0x26c] ss:$16 sps:$4 sm:$0xff]  }
  0xa8   :  { %1750 = vmatmul.mubr.bf16.vlgmr.msra.gmra.mrb[0].mxu0 %v3824_v16  ;;  %1841 = vmatpush1.bf16.msra.mxu1 %v3351_v18  ;;  %v3438_v18 = vld [vmem:[#allocation2 + $0x7e0] ss:$16 sps:$4 sm:$0xff]  }
  0xa9   :  { %1759 = vmatpush1.bf16.msra.mxu0 %v3348_v17  ;;  %1842 = vmatprep.subr.bf16.mxu1 %v3359_v20  ;;  %v3443_v17 = vld [vmem:[#allocation2 + $0x3ec] ss:$16 sps:$4 sm:$0xff]   ;;  %v67_v20 = vld [vmem:[%s3943_s0 + $0x30] sm:$0xff] }
  0xaa   :  { %1760 = vmatprep.subr.bf16.mxu0 %v3356_v19  ;;  %1790 = vmatprep.mubr.bf16.mxu0 %v3831_v24  ;;  %v3441_v19 = vld [vmem:[#allocation2 + $0x3e8] ss:$16 sps:$4 sm:$0xff]  }
  0xab   :  { %1872 = vmatprep.mubr.bf16.mxu1 %v3798_v52  ;;  %v3380_v52 = vld [vmem:[#allocation2 + $0x6a4] ss:$16 sps:$4 sm:$0xff]  }
  0xac   :  { %1843 = vmatpush1.bf16.msra.mxu1 %v3357_v23  ;;  %v3838_v23 = vpack.c.bf16 %v67_v20, %v67_v20  ;;  %v3494_v20 = vld [vmem:[#allocation2 + $0x60c] ss:$16 sps:$4 sm:$0xff]  }
  0xad   :  { %1761 = vmatpush1.bf16.msra.mxu0 %v3354_v22  ;;  %1844 = vmatprep.subr.bf16.mxu1 %v3365_v26  ;;  %v3444_v22 = vld [vmem:[#allocation2 + $0x408] ss:$16 sps:$4 sm:$0xff]  }
  0xae   :  { %1762 = vmatprep.subr.bf16.mxu0 %v3362_v25  ;;  %v3449_v25 = vld [vmem:[#allocation2 + $0x42c] ss:$16 sps:$4 sm:$0xff]   ;;  %v3540_v26 = vld [vmem:[#allocation4] ss:$8 sps:$4 sm:$0xff]  }
  0xb0   :  { %1845 = vmatpush1.bf16.msra.mxu1 %v3363_v28  ;;  %v3447_v28 = vld [vmem:[#allocation2 + $0x428] ss:$16 sps:$4 sm:$0xff]  }
  0xb1   :  { %1763 = vmatpush1.bf16.msra.mxu0 %v3360_v27  ;;  %1846 = vmatprep.subr.bf16.mxu1 %v3371_v8  ;;  %v3542_v27 = vld [vmem:[#allocation4 + $0x4] ss:$8 sps:$4 sm:$0xff]  }
  0xb2   :  { %1764 = vmatprep.subr.bf16.mxu0 %v3368_v29  ;;  %v3545_v29 = vld [vmem:[#allocation4 + $0x14] ss:$8 sps:$4 sm:$0xff]  }
  0xb3   :  { %v3452_v8 = vld [vmem:[#allocation2 + $0x44c] ss:$16 sps:$4 sm:$0xff]  }
  0xb4   :  { %1847 = vmatpush1.bf16.msra.mxu1 %v3369_v31  ;;  %v3548_v31 = vld [vmem:[#allocation4 + $0x24] ss:$8 sps:$4 sm:$0xff]  }
  0xb5   :  { %1765 = vmatpush1.bf16.msra.mxu0 %v3366_v30  ;;  %1848 = vmatprep.subr.bf16.mxu1 %v3377_v33  ;;  %v3543_v30 = vld [vmem:[#allocation4 + $0x10] ss:$8 sps:$4 sm:$0xff]   ;;  %v3455_v33 = vld [vmem:[#allocation2 + $0x46c] ss:$16 sps:$4 sm:$0xff]  }
  0xb6   :  { %1766 = vmatprep.subr.bf16.mxu0 %v3374_v32  ;;  %v3450_v32 = vld [vmem:[#allocation2 + $0x448] ss:$16 sps:$4 sm:$0xff]  }
  0xb8   :  { %1849 = vmatpush1.bf16.msra.mxu1 %v3375_v35  ;;  %v3458_v35 = vld [vmem:[#allocation2 + $0x48c] ss:$16 sps:$4 sm:$0xff]  }
  0xb9   :  { %1767 = vmatpush1.bf16.msra.mxu0 %v3372_v34  ;;  %1850 = vmatprep.subr.bf16.mxu1 %v3383_v37  ;;  %v3453_v34 = vld [vmem:[#allocation2 + $0x468] ss:$16 sps:$4 sm:$0xff]   ;;  %v3554_v37 = vld [vmem:[#allocation4 + $0x44] ss:$8 sps:$4 sm:$0xff]  }
  0xba   :  { %1768 = vmatprep.subr.bf16.mxu0 %v3380_v52  ;;  %v3551_v52 = vld [vmem:[#allocation4 + $0x34] ss:$8 sps:$4 sm:$0xff]  }
  0xbc   :  { %1851 = vmatpush1.bf16.msra.mxu1 %v3381_v39  ;;  %v3461_v39 = vld [vmem:[#allocation2 + $0x4ac] ss:$16 sps:$4 sm:$0xff]  }
  0xbd   :  { %1769 = vmatpush1.bf16.msra.mxu0 %v3378_v38  ;;  %1852 = vmatprep.subr.bf16.mxu1 %v3389_v41  ;;  %v3456_v38 = vld [vmem:[#allocation2 + $0x488] ss:$16 sps:$4 sm:$0xff]   ;;  %v3557_v41 = vld [vmem:[#allocation4 + $0x54] ss:$8 sps:$4 sm:$0xff]  }
  0xbe   :  { %1770 = vmatprep.subr.bf16.mxu0 %v3386_v40  ;;  %v3552_v40 = vld [vmem:[#allocation4 + $0x40] ss:$8 sps:$4 sm:$0xff]  }
  0xc0   :  { %1853 = vmatpush1.bf16.msra.mxu1 %v3387_v43  ;;  %v3464_v43 = vld [vmem:[#allocation2 + $0x4cc] ss:$16 sps:$4 sm:$0xff]  }
  0xc1   :  { %1771 = vmatpush1.bf16.msra.mxu0 %v3384_v42  ;;  %1854 = vmatprep.subr.bf16.mxu1 %v3395_v45  ;;  %v3459_v42 = vld [vmem:[#allocation2 + $0x4a8] ss:$16 sps:$4 sm:$0xff]   ;;  %v3560_v45 = vld [vmem:[#allocation4 + $0x64] ss:$8 sps:$4 sm:$0xff]  }
  0xc2   :  { %1772 = vmatprep.subr.bf16.mxu0 %v3392_v44  ;;  %v3555_v44 = vld [vmem:[#allocation4 + $0x50] ss:$8 sps:$4 sm:$0xff]  }
  0xc4   :  { %1855 = vmatpush1.bf16.msra.mxu1 %v3393_v47  ;;  %v3467_v47 = vld [vmem:[#allocation2 + $0x4ec] ss:$16 sps:$4 sm:$0xff]  }
  0xc5   :  { %1773 = vmatpush1.bf16.msra.mxu0 %v3390_v46  ;;  %1856 = vmatprep.subr.bf16.mxu1 %v3401_v49  ;;  %v3462_v46 = vld [vmem:[#allocation2 + $0x4c8] ss:$16 sps:$4 sm:$0xff]   ;;  %v3563_v49 = vld [vmem:[#allocation4 + $0x74] ss:$8 sps:$4 sm:$0xff]  }
  0xc6   :  { %1774 = vmatprep.subr.bf16.mxu0 %v3398_v48  ;;  %v3558_v48 = vld [vmem:[#allocation4 + $0x60] ss:$8 sps:$4 sm:$0xff]  }
  0xc8   :  { %1857 = vmatpush1.bf16.msra.mxu1 %v3399_v51  ;;  %v3470_v51 = vld [vmem:[#allocation2 + $0x50c] ss:$16 sps:$4 sm:$0xff]  }
  0xc9   :  { %1775 = vmatpush1.bf16.msra.mxu0 %v3396_v50  ;;  %1858 = vmatprep.subr.bf16.mxu1 %v3407_v54  ;;  %v3465_v50 = vld [vmem:[#allocation2 + $0x4e8] ss:$16 sps:$4 sm:$0xff]   ;;  %v3566_v54 = vld [vmem:[#allocation4 + $0x84] ss:$8 sps:$4 sm:$0xff]  }
  0xca   :  { %1776 = vmatprep.subr.bf16.mxu0 %v3404_v53  ;;  %v3561_v53 = vld [vmem:[#allocation4 + $0x70] ss:$8 sps:$4 sm:$0xff]  }
  0xcc   :  { %1859 = vmatpush1.bf16.msra.mxu1 %v3405_v56  ;;  %v3473_v56 = vld [vmem:[#allocation2 + $0x52c] ss:$16 sps:$4 sm:$0xff]  }
  0xcd   :  { %1777 = vmatpush1.bf16.msra.mxu0 %v3402_v55  ;;  %1860 = vmatprep.subr.bf16.mxu1 %v3413_v58  ;;  %v3468_v55 = vld [vmem:[#allocation2 + $0x508] ss:$16 sps:$4 sm:$0xff]   ;;  %v3569_v58 = vld [vmem:[#allocation4 + $0x94] ss:$8 sps:$4 sm:$0xff]  }
  0xce   :  { %1778 = vmatprep.subr.bf16.mxu0 %v3410_v57  ;;  %v3564_v57 = vld [vmem:[#allocation4 + $0x80] ss:$8 sps:$4 sm:$0xff]  }
  0xd0   :  { %1861 = vmatpush1.bf16.msra.mxu1 %v3411_v60  ;;  %v3476_v60 = vld [vmem:[#allocation2 + $0x54c] ss:$16 sps:$4 sm:$0xff]  }
  0xd1   :  { %1779 = vmatpush1.bf16.msra.mxu0 %v3408_v59  ;;  %1862 = vmatprep.subr.bf16.mxu1 %v3419_v62  ;;  %v3471_v59 = vld [vmem:[#allocation2 + $0x528] ss:$16 sps:$4 sm:$0xff]   ;;  %v3572_v62 = vld [vmem:[#allocation4 + $0xa4] ss:$8 sps:$4 sm:$0xff]  }
  0xd2   :  { %1780 = vmatprep.subr.bf16.mxu0 %v3416_v61  ;;  %v3567_v61 = vld [vmem:[#allocation4 + $0x90] ss:$8 sps:$4 sm:$0xff]  }
  0xd4   :  { %1863 = vmatpush1.bf16.msra.mxu1 %v3417_v0  ;;  %v3479_v0 = vld [vmem:[#allocation2 + $0x56c] ss:$16 sps:$4 sm:$0xff]  }
  0xd5   :  { %1781 = vmatpush1.bf16.msra.mxu0 %v3414_v63  ;;  %1864 = vmatprep.subr.bf16.mxu1 %v3425_v2  ;;  %v3474_v63 = vld [vmem:[#allocation2 + $0x548] ss:$16 sps:$4 sm:$0xff]   ;;  %v3575_v2 = vld [vmem:[#allocation4 + $0xb4] ss:$8 sps:$4 sm:$0xff]  }
  0xd6   :  { %1782 = vmatprep.subr.bf16.mxu0 %v3422_v1  ;;  %v3570_v1 = vld [vmem:[#allocation4 + $0xa0] ss:$8 sps:$4 sm:$0xff]  }
  0xd8   :  { %1865 = vmatpush1.bf16.msra.mxu1 %v3423_v4  ;;  %v3482_v4 = vld [vmem:[#allocation2 + $0x58c] ss:$16 sps:$4 sm:$0xff]  }
  0xd9   :  { %1783 = vmatpush1.bf16.msra.mxu0 %v3420_v3  ;;  %1866 = vmatprep.subr.bf16.mxu1 %v3431_v6  ;;  %v3477_v3 = vld [vmem:[#allocation2 + $0x568] ss:$16 sps:$4 sm:$0xff]   ;;  %v3578_v6 = vld [vmem:[#allocation4 + $0xc4] ss:$8 sps:$4 sm:$0xff]  }
  0xda   :  { %1784 = vmatprep.subr.bf16.mxu0 %v3428_v5  ;;  %v3573_v5 = vld [vmem:[#allocation4 + $0xb0] ss:$8 sps:$4 sm:$0xff]  }
  0xdc   :  { %1867 = vmatpush1.bf16.msra.mxu1 %v3429_v9  ;;  %v3485_v9 = vld [vmem:[#allocation2 + $0x5ac] ss:$16 sps:$4 sm:$0xff]  }
  0xdd   :  { %1785 = vmatpush1.bf16.msra.mxu0 %v3426_v7  ;;  %1868 = vmatprep.subr.bf16.mxu1 %v3437_v12  ;;  %v3480_v7 = vld [vmem:[#allocation2 + $0x588] ss:$16 sps:$4 sm:$0xff]   ;;  %v3581_v12 = vld [vmem:[#allocation4 + $0xd4] ss:$8 sps:$4 sm:$0xff]  }
  0xde   :  { %1786 = vmatprep.subr.bf16.mxu0 %v3434_v10  ;;  %v3576_v10 = vld [vmem:[#allocation4 + $0xc0] ss:$8 sps:$4 sm:$0xff]  }
  0xe0   :  { %1869 = vmatpush1.bf16.msra.mxu1 %v3435_v14  ;;  %v3488_v14 = vld [vmem:[#allocation2 + $0x5cc] ss:$16 sps:$4 sm:$0xff]  }
  0xe1   :  { %1787 = vmatpush1.bf16.msra.mxu0 %v3432_v13  ;;  %1870 = vmatprep.subr.bf16.mxu1 %v3443_v17  ;;  %v3483_v13 = vld [vmem:[#allocation2 + $0x5a8] ss:$16 sps:$4 sm:$0xff]  }
  0xe2   :  { %1788 = vmatprep.subr.bf16.mxu0 %v3440_v15  ;;  %v3579_v15 = vld [vmem:[#allocation4 + $0xd0] ss:$8 sps:$4 sm:$0xff]  }
  0xe3   :  { %v3486_v17 = vld [vmem:[#allocation2 + $0x5c8] ss:$16 sps:$4 sm:$0xff]  }
  0xe4   :  { %1871 = vmatpush1.bf16.msra.mxu1 %v3441_v19  ;;  %v3489_v19 = vld [vmem:[#allocation2 + $0x5e8] ss:$16 sps:$4 sm:$0xff]  }
  0xe5   :  { %1789 = vmatpush1.bf16.msra.mxu0 %v3438_v18  ;;  %1881 = vmatprep.subr.bf16.mxu1 %v3446_v21  ;;  %v3491_v18 = vld [vmem:[#allocation2 + $0x5ec] ss:$16 sps:$4 sm:$0xff]   ;;  %v3492_v21 = vld [vmem:[#allocation2 + $0x608] ss:$16 sps:$4 sm:$0xff]  }
  0xe6   :  { %2367 = vmatprep.subr.bf16.mxu0 %v3542_v27  ;;  %v3498_v27 = vld [vmem:[#allocation2 + $0x648] ss:$16 sps:$4 sm:$0xff]  }
  0xe7   :  { %1873 = vmatmul.mubr.bf16.vlgmr.msra.gmra.mrb[4].mxu1 %v3810_v11  ;;  %v3546_v11 = vld [vmem:[#allocation4 + $0x20] ss:$8 sps:$4 sm:$0xff]  }
  0xe8   :  { %1791 = vmatmul.mubr.bf16.vlgmr.msra.gmra.mrb[0].mxu0 %v3838_v23  ;;  %1882 = vmatpush1.bf16.msra.mxu1 %v3444_v22  ;;  %v3497_v22 = vld [vmem:[#allocation2 + $0x62c] ss:$16 sps:$4 sm:$0xff]  }
  0xe9   :  { %1913 = vmatprep.mubr.bf16.mxu1 %v3818_v36  ;;  %1883 = vmatprep.subr.bf16.mxu1 %v3449_v25  ;;  %v3549_v36 = vld [vmem:[#allocation4 + $0x30] ss:$8 sps:$4 sm:$0xff]  }
  0xea   :  { %2368 = vmatpush1.bf16.msra.mxu0 %v3540_v26  ;;  %v3495_v25 = vld [vmem:[#allocation2 + $0x628] ss:$16 sps:$4 sm:$0xff]   ;;  %v3500_v26 = vld [vmem:[#allocation2 + $0x64c] ss:$16 sps:$4 sm:$0xff]  }
  0xeb   :  { %2369 = vmatprep.subr.bf16.mxu0 %v3545_v29  ;;  %v3501_v29 = vld [vmem:[#allocation2 + $0x668] ss:$16 sps:$4 sm:$0xff]  }
  0xec   :  { %1884 = vmatpush1.bf16.msra.mxu1 %v3447_v28  ;;  %v3503_v28 = vld [vmem:[#allocation2 + $0x66c] ss:$16 sps:$4 sm:$0xff]  }
  0xed   :  { %1885 = vmatprep.subr.bf16.mxu1 %v3452_v8  ;;  %v3506_v8 = vld [vmem:[#allocation2 + $0x68c] ss:$16 sps:$4 sm:$0xff]  }
  0xee   :  { %2370 = vmatpush1.bf16.msra.mxu0 %v3543_v30  ;;  %v3504_v30 = vld [vmem:[#allocation2 + $0x688] ss:$16 sps:$4 sm:$0xff]  }
  0xef   :  { %2371 = vmatprep.subr.bf16.mxu0 %v3548_v31  ;;  %v3509_v31 = vld [vmem:[#allocation2 + $0x6ac] ss:$16 sps:$4 sm:$0xff]  }
  0xf0   :  { %1886 = vmatpush1.bf16.msra.mxu1 %v3450_v32  ;;  %v3512_v32 = vld [vmem:[#allocation2 + $0x6cc] ss:$16 sps:$4 sm:$0xff]  }
  0xf1   :  { %1887 = vmatprep.subr.bf16.mxu1 %v3455_v33  ;;  %v3584_v33 = vld [vmem:[#allocation4 + $0xe4] ss:$8 sps:$4 sm:$0xff]  }
  0xf2   :  { %2372 = vmatpush1.bf16.msra.mxu0 %v3546_v11  ;;  %v3582_v11 = vld [vmem:[#allocation4 + $0xe0] ss:$8 sps:$4 sm:$0xff]  }
  0xf3   :  { %2373 = vmatprep.subr.bf16.mxu0 %v3551_v52  ;;  %v3510_v52 = vld [vmem:[#allocation2 + $0x6c8] ss:$16 sps:$4 sm:$0xff]  }
  0xf4   :  { %1888 = vmatpush1.bf16.msra.mxu1 %v3453_v34 }
  0xf5   :  { %1889 = vmatprep.subr.bf16.mxu1 %v3458_v35 }
  0xf6   :  { %2374 = vmatpush1.bf16.msra.mxu0 %v3549_v36 }
  0xf7   :  { %2375 = vmatprep.subr.bf16.mxu0 %v3554_v37  ;;  %v3515_v37 = vld [vmem:[#allocation2 + $0x6ec] ss:$16 sps:$4 sm:$0xff]  }
  0xf8   :  { %1890 = vmatpush1.bf16.msra.mxu1 %v3456_v38  ;;  %v3587_v38 = vld [vmem:[#allocation4 + $0xf4] ss:$8 sps:$4 sm:$0xff]  }
  0xf9   :  { %1891 = vmatprep.subr.bf16.mxu1 %v3461_v39  ;;  %v3585_v39 = vld [vmem:[#allocation4 + $0xf0] ss:$8 sps:$4 sm:$0xff]  }
  0xfa   :  { %2376 = vmatpush1.bf16.msra.mxu0 %v3552_v40  ;;  %v3513_v40 = vld [vmem:[#allocation2 + $0x6e8] ss:$16 sps:$4 sm:$0xff]  }
  0xfb   :  { %2377 = vmatprep.subr.bf16.mxu0 %v3557_v41  ;;  %v3518_v41 = vld [vmem:[#allocation2 + $0x70c] ss:$16 sps:$4 sm:$0xff]  }
  0xfc   :  { %1892 = vmatpush1.bf16.msra.mxu1 %v3459_v42  ;;  %v3590_v42 = vld [vmem:[#allocation4 + $0x104] ss:$8 sps:$4 sm:$0xff]  }
  0xfd   :  { %1893 = vmatprep.subr.bf16.mxu1 %v3464_v43  ;;  %v3516_v43 = vld [vmem:[#allocation2 + $0x708] ss:$16 sps:$4 sm:$0xff]  }
  0xfe   :  { %2378 = vmatpush1.bf16.msra.mxu0 %v3555_v44  ;;  %v3521_v44 = vld [vmem:[#allocation2 + $0x72c] ss:$16 sps:$4 sm:$0xff]  }
  0xff   :  { %2379 = vmatprep.subr.bf16.mxu0 %v3560_v45  ;;  %v3519_v45 = vld [vmem:[#allocation2 + $0x728] ss:$16 sps:$4 sm:$0xff]  }
 0x100   :  { %1894 = vmatpush1.bf16.msra.mxu1 %v3462_v46  ;;  %v3524_v46 = vld [vmem:[#allocation2 + $0x74c] ss:$16 sps:$4 sm:$0xff]  }
 0x101   :  { %1895 = vmatprep.subr.bf16.mxu1 %v3467_v47  ;;  %v3522_v47 = vld [vmem:[#allocation2 + $0x748] ss:$16 sps:$4 sm:$0xff]  }
 0x102   :  { %2380 = vmatpush1.bf16.msra.mxu0 %v3558_v48  ;;  %v3527_v48 = vld [vmem:[#allocation2 + $0x76c] ss:$16 sps:$4 sm:$0xff]  }
 0x103   :  { %2381 = vmatprep.subr.bf16.mxu0 %v3563_v49  ;;  %v3525_v49 = vld [vmem:[#allocation2 + $0x768] ss:$16 sps:$4 sm:$0xff]  }
 0x104   :  { %1896 = vmatpush1.bf16.msra.mxu1 %v3465_v50  ;;  %v3530_v50 = vld [vmem:[#allocation2 + $0x78c] ss:$16 sps:$4 sm:$0xff]  }
 0x105   :  { %1897 = vmatprep.subr.bf16.mxu1 %v3470_v51  ;;  %v3528_v51 = vld [vmem:[#allocation2 + $0x788] ss:$16 sps:$4 sm:$0xff]  }
 0x106   :  { %2382 = vmatpush1.bf16.msra.mxu0 %v3561_v53  ;;  %v3533_v53 = vld [vmem:[#allocation2 + $0x7ac] ss:$16 sps:$4 sm:$0xff]  }
 0x107   :  { %2383 = vmatprep.subr.bf16.mxu0 %v3566_v54  ;;  %v3531_v54 = vld [vmem:[#allocation2 + $0x7a8] ss:$16 sps:$4 sm:$0xff]  }
 0x108   :  { %1898 = vmatpush1.bf16.msra.mxu1 %v3468_v55  ;;  %v3536_v55 = vld [vmem:[#allocation2 + $0x7cc] ss:$16 sps:$4 sm:$0xff]  }
 0x109   :  { %1899 = vmatprep.subr.bf16.mxu1 %v3473_v56  ;;  %v3534_v56 = vld [vmem:[#allocation2 + $0x7c8] ss:$16 sps:$4 sm:$0xff]  }
 0x10a   :  { %2384 = vmatpush1.bf16.msra.mxu0 %v3564_v57  ;;  %v3539_v57 = vld [vmem:[#allocation2 + $0x7ec] ss:$16 sps:$4 sm:$0xff]  }
 0x10b   :  { %2385 = vmatprep.subr.bf16.mxu0 %v3569_v58  ;;  %v3537_v58 = vld [vmem:[#allocation2 + $0x7e8] ss:$16 sps:$4 sm:$0xff]  }
 0x10c   :  { %1900 = vmatpush1.bf16.msra.mxu1 %v3471_v59  ;;  %v335_v59 = vlaneseq }
 0x10d   :  { %1901 = vmatprep.subr.bf16.mxu1 %v3476_v60 }
 0x10e   :  { %2386 = vmatpush1.bf16.msra.mxu0 %v3567_v61  ;;  %v3847_v60 = vshrl.u32 %v335_v59, 7 }
 0x10f   :  { %2387 = vmatprep.subr.bf16.mxu0 %v3572_v62  ;;  %v3853_v62 = vld [vmem:[%s3945_s2] sm:$0xf] }
 0x110   :  { %1902 = vmatpush1.bf16.msra.mxu1 %v3474_v63  ;;  %v337_v61 = vsub.s32 0, %v3847_v60  ;;  %v341_v63 = vsub.s32 1, %v3847_v60 }
 0x111   :  { %1903 = vmatprep.subr.bf16.mxu1 %v3479_v0 }
 0x112   :  { %2388 = vmatpush1.bf16.msra.mxu0 %v3570_v1  ;;  %v338_v0 = vrot.slane %v3853_v62, %v337_v61 }
 0x113   :  { %2389 = vmatprep.subr.bf16.mxu0 %v3575_v2 }
 0x114   :  { %1904 = vmatpush1.bf16.msra.mxu1 %v3477_v3 }
 0x115   :  { %1905 = vmatprep.subr.bf16.mxu1 %v3482_v4 }
 0x116   :  { %2390 = vmatpush1.bf16.msra.mxu0 %v3573_v5 }
 0x117   :  { %2391 = vmatprep.subr.bf16.mxu0 %v3578_v6 }
 0x118   :  { %1906 = vmatpush1.bf16.msra.mxu1 %v3480_v7 }
 0x119   :  { %1907 = vmatprep.subr.bf16.mxu1 %v3485_v9 }
 0x11a   :  { %2392 = vmatpush1.bf16.msra.mxu0 %v3576_v10 }
 0x11b   :  { %2393 = vmatprep.subr.bf16.mxu0 %v3581_v12 }
 0x11c   :  { %1908 = vmatpush1.bf16.msra.mxu1 %v3483_v13 }
 0x11d   :  { %1909 = vmatprep.subr.bf16.mxu1 %v3488_v14  ;;  %v3588_v14 = vld [vmem:[#allocation4 + $0x100] ss:$8 sps:$4 sm:$0xff]  }
 0x11e   :  { %2394 = vmatpush1.bf16.msra.mxu0 %v3579_v15 }
 0x11f   :  { %2395 = vmatprep.subr.bf16.mxu0 %v3584_v33  ;;  %v3617_v33 = vld [vmem:[#allocation4 + $0x194] ss:$8 sps:$4 sm:$0xff]  }
 0x120   :  { %1910 = vmatpush1.bf16.msra.mxu1 %v3486_v17  ;;  %v3593_v17 = vld [vmem:[#allocation4 + $0x114] ss:$8 sps:$4 sm:$0xff]  }
 0x121   :  { %1911 = vmatprep.subr.bf16.mxu1 %v3491_v18  ;;  %v3591_v18 = vld [vmem:[#allocation4 + $0x110] ss:$8 sps:$4 sm:$0xff]  }
 0x122   :  { %2396 = vmatpush1.bf16.msra.mxu0 %v3582_v11  ;;  %v3620_v11 = vld [vmem:[#allocation4 + $0x1a4] ss:$8 sps:$4 sm:$0xff]  }
 0x123   :  { %2397 = vmatprep.subr.bf16.mxu0 %v3587_v38  ;;  %v3629_v38 = vld [vmem:[#allocation4 + $0x1d4] ss:$8 sps:$4 sm:$0xff]  }
 0x124   :  { %1912 = vmatpush1.bf16.msra.mxu1 %v3489_v19  ;;  %v3596_v19 = vld [vmem:[#allocation4 + $0x124] ss:$8 sps:$4 sm:$0xff]  }
 0x125   :  { %1922 = vmatprep.subr.bf16.mxu1 %v3494_v20  ;;  %v3594_v20 = vld [vmem:[#allocation4 + $0x120] ss:$8 sps:$4 sm:$0xff]  }
 0x126   :  { %2398 = vmatpush1.bf16.msra.mxu0 %v3585_v39  ;;  %v3627_v39 = vld [vmem:[#allocation4 + $0x1d0] ss:$8 sps:$4 sm:$0xff]  }
 0x127   :  { %1914 = vmatmul.mubr.bf16.vlgmr.msra.gmra.mrb[4].mxu1 %v3824_v16  ;;  %v3507_v16 = vld [vmem:[#allocation2 + $0x6a8] ss:$16 sps:$4 sm:$0xff]   ;;  %2408 = vmatprep.subr.bf16.mxu0 %v3590_v42  ;;  %v3635_v42 = vld [vmem:[#allocation4 + $0x1f4] ss:$8 sps:$4 sm:$0xff]  }
 0x128   :  { %1923 = vmatpush1.bf16.msra.mxu1 %v3492_v21  ;;  %1954 = vmatprep.mubr.bf16.mxu1 %v3831_v24  ;;  %v3599_v21 = vld [vmem:[#allocation4 + $0x134] ss:$8 sps:$4 sm:$0xff]  }
 0x129   :  { %1924 = vmatprep.subr.bf16.mxu1 %v3497_v22  ;;  %v3597_v22 = vld [vmem:[#allocation4 + $0x130] ss:$8 sps:$4 sm:$0xff]  }
 0x12c   :  { %1925 = vmatpush1.bf16.msra.mxu1 %v3495_v25  ;;  %v3602_v25 = vld [vmem:[#allocation4 + $0x144] ss:$8 sps:$4 sm:$0xff]  }
 0x12d   :  { %1926 = vmatprep.subr.bf16.mxu1 %v3500_v26  ;;  %v3600_v26 = vld [vmem:[#allocation4 + $0x140] ss:$8 sps:$4 sm:$0xff]  }
 0x130   :  { %1927 = vmatpush1.bf16.msra.mxu1 %v3498_v27  ;;  %v3605_v27 = vld [vmem:[#allocation4 + $0x154] ss:$8 sps:$4 sm:$0xff]  }
 0x131   :  { %1928 = vmatprep.subr.bf16.mxu1 %v3503_v28  ;;  %v3603_v28 = vld [vmem:[#allocation4 + $0x150] ss:$8 sps:$4 sm:$0xff]  }
 0x134   :  { %1929 = vmatpush1.bf16.msra.mxu1 %v3501_v29  ;;  %v3608_v29 = vld [vmem:[#allocation4 + $0x164] ss:$8 sps:$4 sm:$0xff]  }
 0x135   :  { %1930 = vmatprep.subr.bf16.mxu1 %v3506_v8  ;;  %v3606_v8 = vld [vmem:[#allocation4 + $0x160] ss:$8 sps:$4 sm:$0xff]  }
 0x138   :  { %1931 = vmatpush1.bf16.msra.mxu1 %v3504_v30  ;;  %v3611_v30 = vld [vmem:[#allocation4 + $0x174] ss:$8 sps:$4 sm:$0xff]  }
 0x139   :  { %1932 = vmatprep.subr.bf16.mxu1 %v3509_v31  ;;  %v3609_v31 = vld [vmem:[#allocation4 + $0x170] ss:$8 sps:$4 sm:$0xff]  }
 0x13a   :  { %v1669_v24 = vpop.f32.mrb[0].mxu1 }
 0x13b   :  { %v1671_v34 = vpop.f32.mrb[1].mxu1  ;;  %v1670_v1 = vadd.f32 %v1669_v24, %v338_v0  ;;  %v3615_v24 = vld [vmem:[#allocation4 + $0x190] ss:$8 sps:$4 sm:$0xff]   ;;  %v3637_v0 = vld [vmem:[%s3948_s5] sm:$0xff]  }
 0x13c   :  { %v1673_v35 = vpop.f32.mrb[2].mxu1  ;;  %1933 = vmatpush1.bf16.msra.mxu1 %v3507_v16  ;;  %v3614_v16 = vld [vmem:[#allocation4 + $0x184] ss:$8 sps:$4 sm:$0xff]  }
 0x13d   :  { %v1674_v36 = vpop.f32.mrb[3].mxu1  ;;  %1934 = vmatprep.subr.bf16.mxu1 %v3512_v32  ;;  %v3612_v32 = vld [vmem:[#allocation4 + $0x180] ss:$8 sps:$4 sm:$0xff]   ;;  %v3623_v35 = vld [vmem:[#allocation4 + $0x1b4] ss:$8 sps:$4 sm:$0xff]  }
 0x13e   :  { %v3626_v36 = vld [vmem:[#allocation4 + $0x1c4] ss:$8 sps:$4 sm:$0xff]  }
 0x140   :  { %1935 = vmatpush1.bf16.msra.mxu1 %v3510_v52  ;;  %v3621_v52 = vld [vmem:[#allocation4 + $0x1b0] ss:$8 sps:$4 sm:$0xff]  }
 0x141   :  { %1936 = vmatprep.subr.bf16.mxu1 %v3515_v37  ;;  %v3624_v37 = vld [vmem:[#allocation4 + $0x1c0] ss:$8 sps:$4 sm:$0xff]  }
 0x144   :  { %1937 = vmatpush1.bf16.msra.mxu1 %v3513_v40  ;;  %v3632_v40 = vld [vmem:[#allocation4 + $0x1e4] ss:$8 sps:$4 sm:$0xff]  }
 0x145   :  { %1938 = vmatprep.subr.bf16.mxu1 %v3518_v41  ;;  %v3630_v41 = vld [vmem:[#allocation4 + $0x1e0] ss:$8 sps:$4 sm:$0xff]  }
 0x148   :  { %1939 = vmatpush1.bf16.msra.mxu1 %v3516_v43  ;;  %v3633_v43 = vld [vmem:[#allocation4 + $0x1f0] ss:$8 sps:$4 sm:$0xff]  }
 0x149   :  { %1940 = vmatprep.subr.bf16.mxu1 %v3521_v44  ;;  %v3636_v44 = vld [vmem:[%s3948_s5 + $0x40] sm:$0xff]  }
 0x14c   :  { %1941 = vmatpush1.bf16.msra.mxu1 %v3519_v45  ;;  %v345_v45 = vsub.s32 2, %v3847_v60 }
 0x14d   :  { %1942 = vmatprep.subr.bf16.mxu1 %v3524_v46  ;;  %v349_v46 = vsub.s32 3, %v3847_v60  ;;  %v3655_v60 = vld [vmem:[%s3950_s7 + $0x18] sm:$0xff]  }
 0x150   :  { %1943 = vmatpush1.bf16.msra.mxu1 %v3522_v47  ;;  %v346_v47 = vrot.slane %v3853_v62, %v345_v45 }
 0x151   :  { %1944 = vmatprep.subr.bf16.mxu1 %v3527_v48  ;;  %v350_v48 = vrot.slane %v3853_v62, %v349_v46 }
 0x154   :  { %1945 = vmatpush1.bf16.msra.mxu1 %v3525_v49 }
 0x155   :  { %1946 = vmatprep.subr.bf16.mxu1 %v3530_v50 }
 0x158   :  { %1947 = vmatpush1.bf16.msra.mxu1 %v3528_v51 }
 0x159   :  { %1948 = vmatprep.subr.bf16.mxu1 %v3533_v53 }
 0x15c   :  { %1949 = vmatpush1.bf16.msra.mxu1 %v3531_v54 }
 0x15d   :  { %1950 = vmatprep.subr.bf16.mxu1 %v3536_v55 }
 0x160   :  { %1951 = vmatpush1.bf16.msra.mxu1 %v3534_v56 }
 0x161   :  { %1952 = vmatprep.subr.bf16.mxu1 %v3539_v57 }
 0x164   :  { %1953 = vmatpush1.bf16.msra.mxu1 %v3537_v58 }
 0x167   :  { %1955 = vmatmul.mubr.bf16.vlgmr.msra.gmra.mrb[4].mxu1 %v3838_v23  ;;  %v342_v23 = vrot.slane %v3853_v62, %v341_v63  ;;  %v3639_v62 = vld [vmem:[%s3948_s5 + $0x8] sm:$0xff]  }
 0x169   :  { %v1672_v2 = vadd.f32 %v1671_v34, %v342_v23  ;;  %v3618_v34 = vld [vmem:[#allocation4 + $0x1a0] ss:$8 sps:$4 sm:$0xff]  }
 0x1bb   :  { %v1792_v3 = vpop.f32.mrb[0].mxu0 }
 0x1bc   :  { %v3117_v4 = vadd.f32 %v1792_v3, %v1670_v1  ;;  %v1794_v5 = vpop.f32.mrb[1].mxu0  ;;  %v3638_v1 = vld [vmem:[%s3948_s5 + $0x48] sm:$0xff]   ;;  %v3641_v3 = vld [vmem:[%s3948_s5 + $0x10] sm:$0xff]  }
 0x1bd   :  { %v3119_v6 = vadd.f32 %v1794_v5, %v1672_v2  ;;  %v1796_v7 = vpop.f32.mrb[2].mxu0  ;;  %v3640_v2 = vld [vmem:[%s3948_s5 + $0x50] sm:$0xff]   ;;  %v3643_v5 = vld [vmem:[%s3948_s5 + $0x18] sm:$0xff]  }
 0x1be   :  { %v1963_v9 = vmax.f32 %v3117_v4, 0.0  ;;  %v1797_v10 = vpop.f32.mrb[3].mxu0  ;;  %v3642_v4 = vld [vmem:[%s3948_s5 + $0x58] sm:$0xff]   ;;  %v3645_v7 = vld [vmem:[%s3948_s5 + $0x20] sm:$0xff]  }
 0x1bf   :  { %v1964_v12 = vmax.f32 %v3119_v6, 0.0  ;;  %v3644_v6 = vld [vmem:[%s3948_s5 + $0x60] sm:$0xff]   ;;  %v3647_v10 = vld [vmem:[%s3948_s5 + $0x28] sm:$0xff]  }
 0x1c0   :  { %v1967_v15 = vpack.c.bf16 %v1963_v9, %v1963_v9  ;;  %v3646_v9 = vld [vmem:[%s3948_s5 + $0x68] sm:$0xff]  }
 0x1c1   :  { %v1968_v13 = vpack.c.bf16 %v1964_v12, %v1964_v12  ;;  %v3648_v12 = vld [vmem:[%s3948_s5 + $0x70] sm:$0xff]  }
 0x1c3   :  { %2399 = vmatprep.mubr.bf16.mxu0 %v1968_v13  ;;  %v3649_v13 = vld [vmem:[%s3948_s5 + $0x30] sm:$0xff]  }
 0x1c4   :  { %2400 = vmatmul.mubr.bf16.vlgmr.msra.gmra.mrb[4].mxu0 %v1967_v15  ;;  %v3651_v15 = vld [vmem:[%s3948_s5 + $0x38] sm:$0xff]  }
 0x1c5   :  { %2409 = vmatpush1.bf16.msra.mxu0 %v3588_v14  ;;  %v3650_v14 = vld [vmem:[%s3948_s5 + $0x78] sm:$0xff]  }
 0x1c6   :  { %2410 = vmatprep.subr.bf16.mxu0 %v3593_v17  ;;  %v3652_v17 = vld [vmem:[%s3950_s7] sm:$0xff]  }
 0x1c9   :  { %2411 = vmatpush1.bf16.msra.mxu0 %v3591_v18  ;;  %v3714_v18 = vmov 0.0  }
 0x1ca   :  { %2412 = vmatprep.subr.bf16.mxu0 %v3596_v19  ;;  %3104 = vmatprep.subr.bf16.mxu1 %v3714_v18  ;;  %v3653_v19 = vld [vmem:[%s3950_s7 + $0x8] sm:$0xff]  }
 0x1cb   :  { %3105 = vmatpush3.bf16.msra.mxu1 %v3652_v17  ;;  %3112 = vmatprep.mubr.msk.bf16.mxu1 %vm3715_vm0, %v3714_v18 }
 0x1cc   :  { %3106 = vmatprep.subr.bf16.mxu1 %v3714_v18 }
 0x1cd   :  { %2413 = vmatpush1.bf16.msra.mxu0 %v3594_v20  ;;  %v2035_v20 = vld [vmem:[%s3947_s4] sm:$0x3] }
 0x1ce   :  { %2414 = vmatprep.subr.bf16.mxu0 %v3599_v21  ;;  %v2040_v21 = vrot.slane %v2035_v20, %v337_v61 }
 0x1cf   :  { %3107 = vmatpush3.bf16.msra.mxu1 %v3653_v19 }
 0x1d0   :  { %3108 = vmatprep.subr.bf16.mxu1 %v3714_v18 }
 0x1d1   :  { %2415 = vmatpush1.bf16.msra.mxu0 %v3597_v22  ;;  %v2044_v22 = vrot.slane %v2035_v20, %v341_v63  ;;  %v3054_v63 = vld [vmem:[%s3949_s6] ss:$0 sm:$0xff] }
 0x1d2   :  { %2416 = vmatprep.subr.bf16.mxu0 %v3602_v25 }
 0x1d5   :  { %2417 = vmatpush1.bf16.msra.mxu0 %v3600_v26 }
 0x1d6   :  { %2418 = vmatprep.subr.bf16.mxu0 %v3605_v27 }
 0x1d9   :  { %2419 = vmatpush1.bf16.msra.mxu0 %v3603_v28 }
 0x1da   :  { %2420 = vmatprep.subr.bf16.mxu0 %v3608_v29 }
 0x1dd   :  { %2421 = vmatpush1.bf16.msra.mxu0 %v3606_v8 }
 0x1de   :  { %2422 = vmatprep.subr.bf16.mxu0 %v3611_v30 }
 0x1e1   :  { %2423 = vmatpush1.bf16.msra.mxu0 %v3609_v31 }
 0x1e2   :  { %2424 = vmatprep.subr.bf16.mxu0 %v3614_v16 }
 0x1e5   :  { %2425 = vmatpush1.bf16.msra.mxu0 %v3612_v32 }
 0x1e6   :  { %2426 = vmatprep.subr.bf16.mxu0 %v3617_v33  ;;  %v3654_v33 = vld [vmem:[%s3950_s7 + $0x10] sm:$0xff]  }
 0x1e7   :  { %3109 = vmatpush3.bf16.msra.mxu1 %v3654_v33 }
 0x1e8   :  { %3110 = vmatprep.subr.bf16.mxu1 %v3714_v18 }
 0x1e9   :  { %2427 = vmatpush1.bf16.msra.mxu0 %v3615_v24 }
 0x1ea   :  { %2428 = vmatprep.subr.bf16.mxu0 %v3620_v11 }
 0x1eb   :  { %3111 = vmatpush3.bf16.msra.mxu1 %v3655_v60 }
 0x1ed   :  { %2429 = vmatpush1.bf16.msra.mxu0 %v3618_v34 }
 0x1ee   :  { %2430 = vmatprep.subr.bf16.mxu0 %v3623_v35 }
 0x1f1   :  { %2431 = vmatpush1.bf16.msra.mxu0 %v3621_v52 }
 0x1f2   :  { %2432 = vmatprep.subr.bf16.mxu0 %v3626_v36 }
 0x1f5   :  { %2433 = vmatpush1.bf16.msra.mxu0 %v3624_v37 }
 0x1f6   :  { %2434 = vmatprep.subr.bf16.mxu0 %v3629_v38  ;;  %v2714_v38 = vand.u32 127, %v335_v59 }
 0x1f8   :  { %vm2715_vm2 = vcmp.lt.s32.totalorder %v2714_v38, 10 }
 0x1f9   :  { %2435 = vmatpush1.bf16.msra.mxu0 %v3627_v39  ;;  %v3071_v39 = vld [vmem:[%s3951_s8] ss:$0 sm:$0xff] }
 0x1fa   :  { %2436 = vmatprep.subr.bf16.mxu0 %v3632_v40 }
 0x1fd   :  { %2437 = vmatpush1.bf16.msra.mxu0 %v3630_v41 }
 0x1fe   :  { %2438 = vmatprep.subr.bf16.mxu0 %v3635_v42 }
 0x201   :  { %2439 = vmatpush1.bf16.msra.mxu0 %v3633_v43 }
 0x202   :  { %3077 = vmatprep.subr.bf16.mxu0 %v3636_v44 }
 0x23a   :  { %v1956_v49 = vpop.f32.mrb[4].mxu1 }
 0x23b   :  { %v3120_v50 = vadd.f32 %v1956_v49, %v346_v47  ;;  %v1958_v51 = vpop.f32.mrb[5].mxu1 }
 0x23c   :  { %v3121_v53 = vadd.f32 %v1958_v51, %v350_v48  ;;  %v1960_v54 = vpop.f32.mrb[6].mxu1 }
 0x23d   :  { %v1965_v55 = vmax.f32 %v3120_v50, 0.0  ;;  %v1961_v56 = vpop.f32.mrb[7].mxu1 }
 0x23e   :  { %v1966_v57 = vmax.f32 %v3121_v53, 0.0 }
 0x23f   :  { %v1969_v23 = vpack.c.bf16 %v1965_v55, %v1965_v55 }
 0x240   :  { %v1970_v58 = vpack.c.bf16 %v1966_v57, %v1966_v57 }
 0x242   :  { %2440 = vmatprep.mubr.bf16.mxu0 %v1970_v58 }
 0x243   :  { %2441 = vmatmul.mubr.bf16.vlgmr.msra.gmra.mrb[4].mxu0 %v1969_v23 }
 0x244   :  { %3078 = vmatpush3.bf16.msra.mxu0 %v3637_v0 }
 0x245   :  { %3079 = vmatprep.subr.bf16.mxu0 %v3638_v1 }
 0x248   :  { %3080 = vmatpush3.bf16.msra.mxu0 %v3639_v62 }
 0x249   :  { %3081 = vmatprep.subr.bf16.mxu0 %v3640_v2 }
 0x24c   :  { %3082 = vmatpush3.bf16.msra.mxu0 %v3641_v3 }
 0x24d   :  { %3083 = vmatprep.subr.bf16.mxu0 %v3642_v4 }
 0x250   :  { %3084 = vmatpush3.bf16.msra.mxu0 %v3643_v5 }
 0x251   :  { %3085 = vmatprep.subr.bf16.mxu0 %v3644_v6 }
 0x254   :  { %3086 = vmatpush3.bf16.msra.mxu0 %v3645_v7 }
 0x255   :  { %3087 = vmatprep.subr.bf16.mxu0 %v3646_v9 }
 0x258   :  { %3088 = vmatpush3.bf16.msra.mxu0 %v3647_v10 }
 0x259   :  { %3089 = vmatprep.subr.bf16.mxu0 %v3648_v12 }
 0x25c   :  { %3090 = vmatpush3.bf16.msra.mxu0 %v3649_v13 }
 0x25d   :  { %3091 = vmatprep.subr.bf16.mxu0 %v3650_v14 }
 0x260   :  { %3092 = vmatpush3.bf16.msra.mxu0 %v3651_v15 }
 0x316   :  { %v2442_v25 = vpop.f32.mrb[4].mxu0 }
 0x317   :  { %v3122_v26 = vadd.f32 %v2442_v25, %v2040_v21  ;;  %v2444_v27 = vpop.f32.mrb[5].mxu0 }
 0x318   :  { %v3123_v28 = vadd.f32 %v2444_v27, %v2044_v22  ;;  %v2446_v29 = vpop.f32.mrb[6].mxu0 }
 0x319   :  { %v2449_v8 = vmax.f32 %v3122_v26, 0.0  ;;  %v2447_v30 = vpop.f32.mrb[7].mxu0 }
 0x31a   :  { %v2450_v31 = vmax.f32 %v3123_v28, 0.0 }
 0x31b   :  { %v2451_v32 = vpack.c.bf16 %v2449_v8, %v2449_v8 }
 0x31c   :  { %v2452_v16 = vpack.c.bf16 %v2450_v31, %v2450_v31 }
 0x31e   :  { %2620 = vmatprep.mubr.bf16.mxu0 %v2452_v16 }
 0x31f   :  { %2621 = vmatmul.mubr.bf16.vlgmr.msra.gmra.mrb[8].mxu0 %v2451_v32 }
 0x3f2   :  { %v3093_v61 = vpop.f32.mrb[8].mxu0 }
 0x3f3   :  { %v3094_v24 = vpop.f32.mrb[9].mxu0 }
 0x3f4   :  { %v3095_v11 = vadd.f32 %v3094_v24, %v3093_v61  ;;  %v3096_v34 = vpop.f32.mrb[10].mxu0 }
 0x3f5   :  { %v3097_v35 = vpop.f32.mrb[11].mxu0 }
 0x3f6   :  { %v2623_v52 = vadd.f32 %v3095_v11, %v3054_v63 }
 0x3f8   :  { %v2628_v36 = vmax.f32 %v2623_v52, 0.0 }
 0x3fa   :  { %v2629_v37 = vpack.c.bf16 %v2628_v36, %v2628_v36 }
 0x3fc   :  { %3113 = vmatmul.mubr.msk.bf16.vlgmr.msra.gmra.mrb[8].mxu1 %vm2669_vm1, %v2629_v37 }
 0x4cf   :  { %v2707_v40 = vpop.f32.mrb[8].mxu1 }
 0x4d0   :  { %v2708_v41 = vadd.f32 %v3071_v39, %v2707_v40  ;;  %v3114_v42 = vpop.f32.mrb[9].mxu1 }
 0x4d1   :  { %v2710_v43 = vpop.f32.mrb[10].mxu1 }
 0x4d2   :  { %v3115_v44 = vpop.f32.mrb[11].mxu1  ;;  %v2716_v45 = vsel %vm2715_vm2, %v2708_v41, -1e+30 }
 0x4d3   :  { %2717 = vmax.xlane.f32.xlu0 %v2716_v45 }
 0x560   :  { %v2718_v46 = vpop.xlane.xlu0 %2717 }
 0x561   :  { %v2719_v47 = vsub.f32 %v2716_v45, %v2718_v46 }
 0x563   :  { %v2720_v48 = vmul.f32 1.442695, %v2719_v47 }
 0x565   :  { %3656 = vpow2.f32 %v2720_v48 }
 0x56f   :  { %v3657_v49 = vpop.eup %3656 }
 0x570   :  { %2722 = vadd.xlane.f32.xlu0 %v3657_v49 }
 0x5fd   :  { %v2723_v50 = vpop.xlane.xlu0 %2722 }
 0x5fe   :  { %3658 = vlog2.f32 %v2723_v50 }
 0x608   :  { %v3659_v59 = vpop.eup %3658 }
 0x609   :  { %v2725_v51 = vmul.f32 0.6931472, %v3659_v59 }
 0x60b   :  { %v2726_v53 = vsub.f32 %v2719_v47, %v2725_v51 }
 0x60d   :  { %2727 = vst [vmem:[%s3952_s9] sm:$0xff] %v2726_v53 }
 0x60e   :  { %2732 = vsyncpa [#allocation3], 1 }
 0x60f   :  { %2733 = vsyncpa [#allocation5], 1 }

</bundles_post_ra>
